<compile_context>
chip_gen: v7x
topology: tpu7x:2x2x1
jax: 0.10.0
libtpu: 0.0.40
codegen_flags: <defaults>
</compile_context>

<pallas_src>
import functools

import jax
import jax.numpy as jnp
from jax import lax
from jax.experimental import pallas as pl
from jax.experimental.pallas import tpu as pltpu


def lstm_fc_kernel(x_ref, wih_ref, whh_ref, bg_ref, wfc_ref, bfc_ref,
                   out_ref, ht_ref, ct_ref, *, seq, bs):
    """Fused input projection + LSTM recurrence + final Linear.

    x_ref   : (seq*bs, in)  flattened input sequence
    wih_ref : (4, in, H)    per-gate input weights  (W_ih_g^T, gate order i,f,g,o)
    whh_ref : (4, H, H)     per-gate recurrent weights (W_hh_g^T)
    bg_ref  : (4, H)        per-gate bias  (b_ih + b_hh)
    wfc_ref : (out, H)      final Linear weights (PyTorch layout)
    bfc_ref : (out,)        final Linear bias, SMEM scalar(s)
    out_ref : (bs, out)     ht_ref / ct_ref : (bs, H)
    """
    in_sz = x_ref.shape[1]
    H = whh_ref.shape[1]
    out_sz = wfc_ref.shape[0]

    x2 = x_ref[...]                                   # (seq*bs, in)
    wih = wih_ref[...]                                # (4, in, H)
    whh = whh_ref[...]                                # (4, H, H) -- register resident
    bg = bg_ref[...]                                  # (4, H)

    # ---- Input projection folded into the kernel prologue (off the serial
    # chain): gx[g][t] = x_t @ W_ih_g^T + (b_ih_g + b_hh_g).
    if in_sz == 1:
        # input_size == 1: pure broadcast multiply-add on the VPU, no matmul.
        gx_flat = [x2 * wih[g] + bg[g][None, :] for g in range(4)]
    else:
        gx_flat = [jnp.dot(x2, wih[g], preferred_element_type=jnp.float32)
                   + bg[g][None, :] for g in range(4)]
    # Static per-timestep slices (prologue-only; independent of h, so the
    # scheduler can place them anywhere before their use).
    gx = [[gx_flat[g][t * bs:(t + 1) * bs, :] for t in range(seq)]
          for g in range(4)]

    h = jnp.zeros((bs, H), jnp.float32)
    c = jnp.zeros((bs, H), jnp.float32)

    # ---- Serial recurrence, fully unrolled (short fixed trip count).
    # Per-gate (H, H) weight blocks: each dot lands directly on its gate's
    # lanes, so no 32/64/96 lane extracts sit on the per-step critical path.
    for t in range(seq):
        ri = jnp.dot(h, whh[0], preferred_element_type=jnp.float32)
        rf = jnp.dot(h, whh[1], preferred_element_type=jnp.float32)
        rg = jnp.dot(h, whh[2], preferred_element_type=jnp.float32)
        ro = jnp.dot(h, whh[3], preferred_element_type=jnp.float32)
        i_g = jax.nn.sigmoid(gx[0][t] + ri)
        f_g = jax.nn.sigmoid(gx[1][t] + rf)
        g_g = jnp.tanh(gx[2][t] + rg)
        o_g = jax.nn.sigmoid(gx[3][t] + ro)
        c = f_g * c + i_g * g_g
        h = o_g * jnp.tanh(c)

    ht_ref[...] = h
    ct_ref[...] = c

    # ---- Final Linear: out_sz is tiny (=1), so a lane reduction beats an
    # N=1 MXU matmul at the epilogue; bias comes from SMEM (no (1,1) vreg).
    wfc = wfc_ref[...]                                # (out, H)
    cols = [jnp.sum(h * wfc[o:o + 1, :], axis=-1, keepdims=True) + bfc_ref[o]
            for o in range(out_sz)]
    out_ref[...] = cols[0] if out_sz == 1 else jnp.concatenate(cols, axis=-1)


def mylstm_forward(x, params):
    """x: (seq, bs, input_size) f32. Returns (out, (ht, ct)) like the module."""
    seq, bs, in_sz = x.shape
    H = params["w_hh"].shape[1]
    out_sz = params["w_fc"].shape[0]

    # Weight layout plumbing only (x-independent, constant-size): split per
    # gate (PyTorch order i, f, g, o) and pre-transpose so every in-kernel dot
    # is `h @ W_g^T` directly.  The x-dependent gx compute lives in the kernel.
    x2 = x.reshape(seq * bs, in_sz).astype(jnp.float32)
    wih = params["w_ih"].reshape(4, H, in_sz).transpose(0, 2, 1)  # (4, in, H)
    whh = params["w_hh"].reshape(4, H, H).transpose(0, 2, 1)      # (4, H, H)
    bg = (params["b_ih"] + params["b_hh"]).reshape(4, H)          # (4, H)
    wfc = params["w_fc"]                                          # (out, H)
    bfc = params["b_fc"]                                          # (out,)

    vmem = pl.BlockSpec(memory_space=pltpu.MemorySpace.VMEM)
    smem = pl.BlockSpec(memory_space=pltpu.MemorySpace.SMEM)
    out, ht, ct = pl.pallas_call(
        functools.partial(lstm_fc_kernel, seq=seq, bs=bs),
        out_shape=(
            jax.ShapeDtypeStruct((bs, out_sz), jnp.float32),
            jax.ShapeDtypeStruct((bs, H), jnp.float32),
            jax.ShapeDtypeStruct((bs, H), jnp.float32),
        ),
        in_specs=[vmem, vmem, vmem, vmem, vmem, smem],
        out_specs=(vmem, vmem, vmem),
    )(x2, wih, whh, bg, wfc, bfc)

    # PyTorch returns ht/ct with a leading num_layers axis (=1 here). Glue.
    return out, (ht[None], ct[None])


def reference_forward(x, params):
    """Pure-JAX reference (mirrors torch.nn.LSTM + Linear semantics)."""
    seq, bs, _ = x.shape
    H = params["w_hh"].shape[1]
    w_ih_t = params["w_ih"].T
    w_hh_t = params["w_hh"].T
    b = params["b_ih"] + params["b_hh"]

    def step(carry, x_t):
        h, c = carry
        g = x_t @ w_ih_t + h @ w_hh_t + b
        i = jax.nn.sigmoid(g[:, 0 * H:1 * H])
        f = jax.nn.sigmoid(g[:, 1 * H:2 * H])
        gg = jnp.tanh(g[:, 2 * H:3 * H])
        o = jax.nn.sigmoid(g[:, 3 * H:4 * H])
        c = f * c + i * gg
        h = o * jnp.tanh(c)
        return (h, c), h

    h0 = jnp.zeros((bs, H), jnp.float32)
    (hT, cT), _ = lax.scan(step, (h0, h0), x)
    out = hT @ params["w_fc"].T + params["b_fc"]
    return out, (hT[None], cT[None])


def init_params(key, input_size, hidden_size, output_size):
    """Deterministic init; same shapes / uniform(-1/sqrt(H), 1/sqrt(H)) as torch."""
    ks = jax.random.split(key, 6)
    s = 1.0 / jnp.sqrt(hidden_size)
    u = lambda k, shp: jax.random.uniform(k, shp, jnp.float32, -s, s)
    return {
        "w_ih": u(ks[0], (4 * hidden_size, input_size)),
        "w_hh": u(ks[1], (4 * hidden_size, hidden_size)),
        "b_ih": u(ks[2], (4 * hidden_size,)),
        "b_hh": u(ks[3], (4 * hidden_size,)),
        "w_fc": u(ks[4], (output_size, hidden_size)),
        "b_fc": u(ks[5], (output_size,)),
    }


if __name__ == "__main__":
    SEQ, BS, IN, HID, OUT = 8, 2, 1, 32, 1

    key = jax.random.PRNGKey(0)
    k_x, k_p = jax.random.split(key)
    x = jax.random.normal(k_x, (SEQ, BS, IN), jnp.float32)
    params = init_params(k_p, IN, HID, OUT)

    fwd = jax.jit(mylstm_forward)
    out, (ht, ct) = fwd(x, params)
    jax.block_until_ready((out, ht, ct))

    out_ref, (ht_ref, ct_ref) = reference_forward(x, params)
    assert jnp.allclose(out, out_ref, atol=1e-5, rtol=1e-5)
    assert jnp.allclose(ht, ht_ref, atol=1e-5, rtol=1e-5)
    assert jnp.allclose(ct, ct_ref, atol=1e-5, rtol=1e-5)

    print("KERNEL_OK")
</pallas_src>

<mosaic_0001>
module attributes {stable_mosaic.version = 11 : i64} {
  func.func @lstm_fc_kernel(%arg0: memref<16x1xf32, #tpu.memory_space<vmem>>, %arg1: memref<4x1x32xf32, #tpu.memory_space<vmem>>, %arg2: memref<4x32x32xf32, #tpu.memory_space<vmem>>, %arg3: memref<4x32xf32, #tpu.memory_space<vmem>>, %arg4: memref<1x32xf32, #tpu.memory_space<vmem>>, %arg5: memref<1xf32, #tpu.memory_space<smem>>, %arg6: memref<2x1xf32, #tpu.memory_space<vmem>>, %arg7: memref<2x32xf32, #tpu.memory_space<vmem>>, %arg8: memref<2x32xf32, #tpu.memory_space<vmem>>) attributes {dimension_semantics = [], scalar_prefetch = 0 : i64, scratch_operands = 0 : i64, tpu.core_type = #tpu.core_type<tc>} {
    %c0 = arith.constant 0 : index
    %c0_0 = arith.constant 0 : index
    %0 = vector.load %arg0[%c0, %c0_0] : memref<16x1xf32, #tpu.memory_space<vmem>>, vector<16x1xf32>
    %c0_1 = arith.constant 0 : index
    %c0_2 = arith.constant 0 : index
    %c0_3 = arith.constant 0 : index
    %1 = vector.load %arg1[%c0_1, %c0_2, %c0_3] : memref<4x1x32xf32, #tpu.memory_space<vmem>>, vector<4x1x32xf32>
    %c0_4 = arith.constant 0 : index
    %c0_5 = arith.constant 0 : index
    %c0_6 = arith.constant 0 : index
    %2 = vector.load %arg2[%c0_4, %c0_5, %c0_6] : memref<4x32x32xf32, #tpu.memory_space<vmem>>, vector<4x32x32xf32>
    %c0_7 = arith.constant 0 : index
    %c0_8 = arith.constant 0 : index
    %3 = vector.load %arg3[%c0_7, %c0_8] : memref<4x32xf32, #tpu.memory_space<vmem>>, vector<4x32xf32>
    %4 = vector.extract_strided_slice %1 {offsets = [0, 0, 0], sizes = [1, 1, 32], strides = [1, 1, 1]} : vector<4x1x32xf32> to vector<1x1x32xf32>
    %5 = vector.shape_cast %4 : vector<1x1x32xf32> to vector<1x32xf32>
    %6 = vector.broadcast %0 : vector<16x1xf32> to vector<16x32xf32>
    %7 = vector.broadcast %5 : vector<1x32xf32> to vector<16x32xf32>
    %8 = arith.mulf %6, %7 : vector<16x32xf32>
    %9 = vector.extract_strided_slice %3 {offsets = [0, 0], sizes = [1, 32], strides = [1, 1]} : vector<4x32xf32> to vector<1x32xf32>
    %10 = vector.shape_cast %9 : vector<1x32xf32> to vector<32xf32>
    %11 = vector.shape_cast %10 : vector<32xf32> to vector<1x32xf32>
    %12 = vector.broadcast %11 : vector<1x32xf32> to vector<16x32xf32>
    %13 = arith.addf %8, %12 : vector<16x32xf32>
    %14 = vector.extract_strided_slice %1 {offsets = [1, 0, 0], sizes = [1, 1, 32], strides = [1, 1, 1]} : vector<4x1x32xf32> to vector<1x1x32xf32>
    %15 = vector.shape_cast %14 : vector<1x1x32xf32> to vector<1x32xf32>
    %16 = vector.broadcast %0 : vector<16x1xf32> to vector<16x32xf32>
    %17 = vector.broadcast %15 : vector<1x32xf32> to vector<16x32xf32>
    %18 = arith.mulf %16, %17 : vector<16x32xf32>
    %19 = vector.extract_strided_slice %3 {offsets = [1, 0], sizes = [1, 32], strides = [1, 1]} : vector<4x32xf32> to vector<1x32xf32>
    %20 = vector.shape_cast %19 : vector<1x32xf32> to vector<32xf32>
    %21 = vector.shape_cast %20 : vector<32xf32> to vector<1x32xf32>
    %22 = vector.broadcast %21 : vector<1x32xf32> to vector<16x32xf32>
    %23 = arith.addf %18, %22 : vector<16x32xf32>
    %24 = vector.extract_strided_slice %1 {offsets = [2, 0, 0], sizes = [1, 1, 32], strides = [1, 1, 1]} : vector<4x1x32xf32> to vector<1x1x32xf32>
    %25 = vector.shape_cast %24 : vector<1x1x32xf32> to vector<1x32xf32>
    %26 = vector.broadcast %0 : vector<16x1xf32> to vector<16x32xf32>
    %27 = vector.broadcast %25 : vector<1x32xf32> to vector<16x32xf32>
    %28 = arith.mulf %26, %27 : vector<16x32xf32>
    %29 = vector.extract_strided_slice %3 {offsets = [2, 0], sizes = [1, 32], strides = [1, 1]} : vector<4x32xf32> to vector<1x32xf32>
    %30 = vector.shape_cast %29 : vector<1x32xf32> to vector<32xf32>
    %31 = vector.shape_cast %30 : vector<32xf32> to vector<1x32xf32>
    %32 = vector.broadcast %31 : vector<1x32xf32> to vector<16x32xf32>
    %33 = arith.addf %28, %32 : vector<16x32xf32>
    %34 = vector.extract_strided_slice %1 {offsets = [3, 0, 0], sizes = [1, 1, 32], strides = [1, 1, 1]} : vector<4x1x32xf32> to vector<1x1x32xf32>
    %35 = vector.shape_cast %34 : vector<1x1x32xf32> to vector<1x32xf32>
    %36 = vector.broadcast %0 : vector<16x1xf32> to vector<16x32xf32>
    %37 = vector.broadcast %35 : vector<1x32xf32> to vector<16x32xf32>
    %38 = arith.mulf %36, %37 : vector<16x32xf32>
    %39 = vector.extract_strided_slice %3 {offsets = [3, 0], sizes = [1, 32], strides = [1, 1]} : vector<4x32xf32> to vector<1x32xf32>
    %40 = vector.shape_cast %39 : vector<1x32xf32> to vector<32xf32>
    %41 = vector.shape_cast %40 : vector<32xf32> to vector<1x32xf32>
    %42 = vector.broadcast %41 : vector<1x32xf32> to vector<16x32xf32>
    %43 = arith.addf %38, %42 : vector<16x32xf32>
    %44 = vector.extract_strided_slice %13 {offsets = [0, 0], sizes = [2, 32], strides = [1, 1]} : vector<16x32xf32> to vector<2x32xf32>
    %45 = vector.extract_strided_slice %13 {offsets = [2, 0], sizes = [2, 32], strides = [1, 1]} : vector<16x32xf32> to vector<2x32xf32>
    %46 = vector.extract_strided_slice %13 {offsets = [4, 0], sizes = [2, 32], strides = [1, 1]} : vector<16x32xf32> to vector<2x32xf32>
    %47 = vector.extract_strided_slice %13 {offsets = [6, 0], sizes = [2, 32], strides = [1, 1]} : vector<16x32xf32> to vector<2x32xf32>
    %48 = vector.extract_strided_slice %13 {offsets = [8, 0], sizes = [2, 32], strides = [1, 1]} : vector<16x32xf32> to vector<2x32xf32>
    %49 = vector.extract_strided_slice %13 {offsets = [10, 0], sizes = [2, 32], strides = [1, 1]} : vector<16x32xf32> to vector<2x32xf32>
    %50 = vector.extract_strided_slice %13 {offsets = [12, 0], sizes = [2, 32], strides = [1, 1]} : vector<16x32xf32> to vector<2x32xf32>
    %51 = vector.extract_strided_slice %13 {offsets = [14, 0], sizes = [2, 32], strides = [1, 1]} : vector<16x32xf32> to vector<2x32xf32>
    %52 = vector.extract_strided_slice %23 {offsets = [0, 0], sizes = [2, 32], strides = [1, 1]} : vector<16x32xf32> to vector<2x32xf32>
    %53 = vector.extract_strided_slice %23 {offsets = [2, 0], sizes = [2, 32], strides = [1, 1]} : vector<16x32xf32> to vector<2x32xf32>
    %54 = vector.extract_strided_slice %23 {offsets = [4, 0], sizes = [2, 32], strides = [1, 1]} : vector<16x32xf32> to vector<2x32xf32>
    %55 = vector.extract_strided_slice %23 {offsets = [6, 0], sizes = [2, 32], strides = [1, 1]} : vector<16x32xf32> to vector<2x32xf32>
    %56 = vector.extract_strided_slice %23 {offsets = [8, 0], sizes = [2, 32], strides = [1, 1]} : vector<16x32xf32> to vector<2x32xf32>
    %57 = vector.extract_strided_slice %23 {offsets = [10, 0], sizes = [2, 32], strides = [1, 1]} : vector<16x32xf32> to vector<2x32xf32>
    %58 = vector.extract_strided_slice %23 {offsets = [12, 0], sizes = [2, 32], strides = [1, 1]} : vector<16x32xf32> to vector<2x32xf32>
    %59 = vector.extract_strided_slice %23 {offsets = [14, 0], sizes = [2, 32], strides = [1, 1]} : vector<16x32xf32> to vector<2x32xf32>
    %60 = vector.extract_strided_slice %33 {offsets = [0, 0], sizes = [2, 32], strides = [1, 1]} : vector<16x32xf32> to vector<2x32xf32>
    %61 = vector.extract_strided_slice %33 {offsets = [2, 0], sizes = [2, 32], strides = [1, 1]} : vector<16x32xf32> to vector<2x32xf32>
    %62 = vector.extract_strided_slice %33 {offsets = [4, 0], sizes = [2, 32], strides = [1, 1]} : vector<16x32xf32> to vector<2x32xf32>
    %63 = vector.extract_strided_slice %33 {offsets = [6, 0], sizes = [2, 32], strides = [1, 1]} : vector<16x32xf32> to vector<2x32xf32>
    %64 = vector.extract_strided_slice %33 {offsets = [8, 0], sizes = [2, 32], strides = [1, 1]} : vector<16x32xf32> to vector<2x32xf32>
    %65 = vector.extract_strided_slice %33 {offsets = [10, 0], sizes = [2, 32], strides = [1, 1]} : vector<16x32xf32> to vector<2x32xf32>
    %66 = vector.extract_strided_slice %33 {offsets = [12, 0], sizes = [2, 32], strides = [1, 1]} : vector<16x32xf32> to vector<2x32xf32>
    %67 = vector.extract_strided_slice %33 {offsets = [14, 0], sizes = [2, 32], strides = [1, 1]} : vector<16x32xf32> to vector<2x32xf32>
    %68 = vector.extract_strided_slice %43 {offsets = [0, 0], sizes = [2, 32], strides = [1, 1]} : vector<16x32xf32> to vector<2x32xf32>
    %69 = vector.extract_strided_slice %43 {offsets = [2, 0], sizes = [2, 32], strides = [1, 1]} : vector<16x32xf32> to vector<2x32xf32>
    %70 = vector.extract_strided_slice %43 {offsets = [4, 0], sizes = [2, 32], strides = [1, 1]} : vector<16x32xf32> to vector<2x32xf32>
    %71 = vector.extract_strided_slice %43 {offsets = [6, 0], sizes = [2, 32], strides = [1, 1]} : vector<16x32xf32> to vector<2x32xf32>
    %72 = vector.extract_strided_slice %43 {offsets = [8, 0], sizes = [2, 32], strides = [1, 1]} : vector<16x32xf32> to vector<2x32xf32>
    %73 = vector.extract_strided_slice %43 {offsets = [10, 0], sizes = [2, 32], strides = [1, 1]} : vector<16x32xf32> to vector<2x32xf32>
    %74 = vector.extract_strided_slice %43 {offsets = [12, 0], sizes = [2, 32], strides = [1, 1]} : vector<16x32xf32> to vector<2x32xf32>
    %75 = vector.extract_strided_slice %43 {offsets = [14, 0], sizes = [2, 32], strides = [1, 1]} : vector<16x32xf32> to vector<2x32xf32>
    %cst = arith.constant 0.000000e+00 : f32
    %76 = vector.broadcast %cst : f32 to vector<2x32xf32>
    %cst_9 = arith.constant 0.000000e+00 : f32
    %77 = vector.broadcast %cst_9 : f32 to vector<2x32xf32>
    %78 = vector.extract_strided_slice %2 {offsets = [0, 0, 0], sizes = [1, 32, 32], strides = [1, 1, 1]} : vector<4x32x32xf32> to vector<1x32x32xf32>
    %79 = vector.shape_cast %78 : vector<1x32x32xf32> to vector<32x32xf32>
    %cst_10 = arith.constant dense<0.000000e+00> : vector<2x32xf32>
    %80 = tpu.matmul %76, %79, %cst_10 {dimension_numbers = #tpu.dot_dimension_numbers<[1], [0], [0], [1], [0, 0, 1, 1], [], []>} : vector<2x32xf32>, vector<32x32xf32>, vector<2x32xf32> -> vector<2x32xf32>
    %81 = vector.extract_strided_slice %2 {offsets = [1, 0, 0], sizes = [1, 32, 32], strides = [1, 1, 1]} : vector<4x32x32xf32> to vector<1x32x32xf32>
    %82 = vector.shape_cast %81 : vector<1x32x32xf32> to vector<32x32xf32>
    %cst_11 = arith.constant dense<0.000000e+00> : vector<2x32xf32>
    %83 = tpu.matmul %76, %82, %cst_11 {dimension_numbers = #tpu.dot_dimension_numbers<[1], [0], [0], [1], [0, 0, 1, 1], [], []>} : vector<2x32xf32>, vector<32x32xf32>, vector<2x32xf32> -> vector<2x32xf32>
    %84 = vector.extract_strided_slice %2 {offsets = [2, 0, 0], sizes = [1, 32, 32], strides = [1, 1, 1]} : vector<4x32x32xf32> to vector<1x32x32xf32>
    %85 = vector.shape_cast %84 : vector<1x32x32xf32> to vector<32x32xf32>
    %cst_12 = arith.constant dense<0.000000e+00> : vector<2x32xf32>
    %86 = tpu.matmul %76, %85, %cst_12 {dimension_numbers = #tpu.dot_dimension_numbers<[1], [0], [0], [1], [0, 0, 1, 1], [], []>} : vector<2x32xf32>, vector<32x32xf32>, vector<2x32xf32> -> vector<2x32xf32>
    %87 = vector.extract_strided_slice %2 {offsets = [3, 0, 0], sizes = [1, 32, 32], strides = [1, 1, 1]} : vector<4x32x32xf32> to vector<1x32x32xf32>
    %88 = vector.shape_cast %87 : vector<1x32x32xf32> to vector<32x32xf32>
    %cst_13 = arith.constant dense<0.000000e+00> : vector<2x32xf32>
    %89 = tpu.matmul %76, %88, %cst_13 {dimension_numbers = #tpu.dot_dimension_numbers<[1], [0], [0], [1], [0, 0, 1, 1], [], []>} : vector<2x32xf32>, vector<32x32xf32>, vector<2x32xf32> -> vector<2x32xf32>
    %90 = arith.addf %44, %80 : vector<2x32xf32>
    %91 = arith.negf %90 : vector<2x32xf32>
    %92 = math.exp %91 : vector<2x32xf32>
    %cst_14 = arith.constant 1.000000e+00 : f32
    %93 = vector.broadcast %cst_14 : f32 to vector<2x32xf32>
    %94 = arith.addf %93, %92 : vector<2x32xf32>
    %95 = arith.divf %93, %94 : vector<2x32xf32>
    %96 = arith.addf %52, %83 : vector<2x32xf32>
    %97 = arith.negf %96 : vector<2x32xf32>
    %98 = math.exp %97 : vector<2x32xf32>
    %cst_15 = arith.constant 1.000000e+00 : f32
    %99 = vector.broadcast %cst_15 : f32 to vector<2x32xf32>
    %100 = arith.addf %99, %98 : vector<2x32xf32>
    %101 = arith.divf %99, %100 : vector<2x32xf32>
    %102 = arith.addf %60, %86 : vector<2x32xf32>
    %103 = math.tanh %102 : vector<2x32xf32>
    %104 = arith.addf %68, %89 : vector<2x32xf32>
    %105 = arith.negf %104 : vector<2x32xf32>
    %106 = math.exp %105 : vector<2x32xf32>
    %cst_16 = arith.constant 1.000000e+00 : f32
    %107 = vector.broadcast %cst_16 : f32 to vector<2x32xf32>
    %108 = arith.addf %107, %106 : vector<2x32xf32>
    %109 = arith.divf %107, %108 : vector<2x32xf32>
    %110 = arith.mulf %101, %77 : vector<2x32xf32>
    %111 = arith.mulf %95, %103 : vector<2x32xf32>
    %112 = arith.addf %110, %111 : vector<2x32xf32>
    %113 = math.tanh %112 : vector<2x32xf32>
    %114 = arith.mulf %109, %113 : vector<2x32xf32>
    %115 = vector.extract_strided_slice %2 {offsets = [0, 0, 0], sizes = [1, 32, 32], strides = [1, 1, 1]} : vector<4x32x32xf32> to vector<1x32x32xf32>
    %116 = vector.shape_cast %115 : vector<1x32x32xf32> to vector<32x32xf32>
    %cst_17 = arith.constant dense<0.000000e+00> : vector<2x32xf32>
    %117 = tpu.matmul %114, %116, %cst_17 {dimension_numbers = #tpu.dot_dimension_numbers<[1], [0], [0], [1], [0, 0, 1, 1], [], []>} : vector<2x32xf32>, vector<32x32xf32>, vector<2x32xf32> -> vector<2x32xf32>
    %118 = vector.extract_strided_slice %2 {offsets = [1, 0, 0], sizes = [1, 32, 32], strides = [1, 1, 1]} : vector<4x32x32xf32> to vector<1x32x32xf32>
    %119 = vector.shape_cast %118 : vector<1x32x32xf32> to vector<32x32xf32>
    %cst_18 = arith.constant dense<0.000000e+00> : vector<2x32xf32>
    %120 = tpu.matmul %114, %119, %cst_18 {dimension_numbers = #tpu.dot_dimension_numbers<[1], [0], [0], [1], [0, 0, 1, 1], [], []>} : vector<2x32xf32>, vector<32x32xf32>, vector<2x32xf32> -> vector<2x32xf32>
    %121 = vector.extract_strided_slice %2 {offsets = [2, 0, 0], sizes = [1, 32, 32], strides = [1, 1, 1]} : vector<4x32x32xf32> to vector<1x32x32xf32>
    %122 = vector.shape_cast %121 : vector<1x32x32xf32> to vector<32x32xf32>
    %cst_19 = arith.constant dense<0.000000e+00> : vector<2x32xf32>
    %123 = tpu.matmul %114, %122, %cst_19 {dimension_numbers = #tpu.dot_dimension_numbers<[1], [0], [0], [1], [0, 0, 1, 1], [], []>} : vector<2x32xf32>, vector<32x32xf32>, vector<2x32xf32> -> vector<2x32xf32>
    %124 = vector.extract_strided_slice %2 {offsets = [3, 0, 0], sizes = [1, 32, 32], strides = [1, 1, 1]} : vector<4x32x32xf32> to vector<1x32x32xf32>
    %125 = vector.shape_cast %124 : vector<1x32x32xf32> to vector<32x32xf32>
    %cst_20 = arith.constant dense<0.000000e+00> : vector<2x32xf32>
    %126 = tpu.matmul %114, %125, %cst_20 {dimension_numbers = #tpu.dot_dimension_numbers<[1], [0], [0], [1], [0, 0, 1, 1], [], []>} : vector<2x32xf32>, vector<32x32xf32>, vector<2x32xf32> -> vector<2x32xf32>
    %127 = arith.addf %45, %117 : vector<2x32xf32>
    %128 = arith.negf %127 : vector<2x32xf32>
    %129 = math.exp %128 : vector<2x32xf32>
    %cst_21 = arith.constant 1.000000e+00 : f32
    %130 = vector.broadcast %cst_21 : f32 to vector<2x32xf32>
    %131 = arith.addf %130, %129 : vector<2x32xf32>
    %132 = arith.divf %130, %131 : vector<2x32xf32>
    %133 = arith.addf %53, %120 : vector<2x32xf32>
    %134 = arith.negf %133 : vector<2x32xf32>
    %135 = math.exp %134 : vector<2x32xf32>
    %cst_22 = arith.constant 1.000000e+00 : f32
    %136 = vector.broadcast %cst_22 : f32 to vector<2x32xf32>
    %137 = arith.addf %136, %135 : vector<2x32xf32>
    %138 = arith.divf %136, %137 : vector<2x32xf32>
    %139 = arith.addf %61, %123 : vector<2x32xf32>
    %140 = math.tanh %139 : vector<2x32xf32>
    %141 = arith.addf %69, %126 : vector<2x32xf32>
    %142 = arith.negf %141 : vector<2x32xf32>
    %143 = math.exp %142 : vector<2x32xf32>
    %cst_23 = arith.constant 1.000000e+00 : f32
    %144 = vector.broadcast %cst_23 : f32 to vector<2x32xf32>
    %145 = arith.addf %144, %143 : vector<2x32xf32>
    %146 = arith.divf %144, %145 : vector<2x32xf32>
    %147 = arith.mulf %138, %112 : vector<2x32xf32>
    %148 = arith.mulf %132, %140 : vector<2x32xf32>
    %149 = arith.addf %147, %148 : vector<2x32xf32>
    %150 = math.tanh %149 : vector<2x32xf32>
    %151 = arith.mulf %146, %150 : vector<2x32xf32>
    %152 = vector.extract_strided_slice %2 {offsets = [0, 0, 0], sizes = [1, 32, 32], strides = [1, 1, 1]} : vector<4x32x32xf32> to vector<1x32x32xf32>
    %153 = vector.shape_cast %152 : vector<1x32x32xf32> to vector<32x32xf32>
    %cst_24 = arith.constant dense<0.000000e+00> : vector<2x32xf32>
    %154 = tpu.matmul %151, %153, %cst_24 {dimension_numbers = #tpu.dot_dimension_numbers<[1], [0], [0], [1], [0, 0, 1, 1], [], []>} : vector<2x32xf32>, vector<32x32xf32>, vector<2x32xf32> -> vector<2x32xf32>
    %155 = vector.extract_strided_slice %2 {offsets = [1, 0, 0], sizes = [1, 32, 32], strides = [1, 1, 1]} : vector<4x32x32xf32> to vector<1x32x32xf32>
    %156 = vector.shape_cast %155 : vector<1x32x32xf32> to vector<32x32xf32>
    %cst_25 = arith.constant dense<0.000000e+00> : vector<2x32xf32>
    %157 = tpu.matmul %151, %156, %cst_25 {dimension_numbers = #tpu.dot_dimension_numbers<[1], [0], [0], [1], [0, 0, 1, 1], [], []>} : vector<2x32xf32>, vector<32x32xf32>, vector<2x32xf32> -> vector<2x32xf32>
    %158 = vector.extract_strided_slice %2 {offsets = [2, 0, 0], sizes = [1, 32, 32], strides = [1, 1, 1]} : vector<4x32x32xf32> to vector<1x32x32xf32>
    %159 = vector.shape_cast %158 : vector<1x32x32xf32> to vector<32x32xf32>
    %cst_26 = arith.constant dense<0.000000e+00> : vector<2x32xf32>
    %160 = tpu.matmul %151, %159, %cst_26 {dimension_numbers = #tpu.dot_dimension_numbers<[1], [0], [0], [1], [0, 0, 1, 1], [], []>} : vector<2x32xf32>, vector<32x32xf32>, vector<2x32xf32> -> vector<2x32xf32>
    %161 = vector.extract_strided_slice %2 {offsets = [3, 0, 0], sizes = [1, 32, 32], strides = [1, 1, 1]} : vector<4x32x32xf32> to vector<1x32x32xf32>
    %162 = vector.shape_cast %161 : vector<1x32x32xf32> to vector<32x32xf32>
    %cst_27 = arith.constant dense<0.000000e+00> : vector<2x32xf32>
    %163 = tpu.matmul %151, %162, %cst_27 {dimension_numbers = #tpu.dot_dimension_numbers<[1], [0], [0], [1], [0, 0, 1, 1], [], []>} : vector<2x32xf32>, vector<32x32xf32>, vector<2x32xf32> -> vector<2x32xf32>
    %164 = arith.addf %46, %154 : vector<2x32xf32>
    %165 = arith.negf %164 : vector<2x32xf32>
    %166 = math.exp %165 : vector<2x32xf32>
    %cst_28 = arith.constant 1.000000e+00 : f32
    %167 = vector.broadcast %cst_28 : f32 to vector<2x32xf32>
    %168 = arith.addf %167, %166 : vector<2x32xf32>
    %169 = arith.divf %167, %168 : vector<2x32xf32>
    %170 = arith.addf %54, %157 : vector<2x32xf32>
    %171 = arith.negf %170 : vector<2x32xf32>
    %172 = math.exp %171 : vector<2x32xf32>
    %cst_29 = arith.constant 1.000000e+00 : f32
    %173 = vector.broadcast %cst_29 : f32 to vector<2x32xf32>
    %174 = arith.addf %173, %172 : vector<2x32xf32>
    %175 = arith.divf %173, %174 : vector<2x32xf32>
    %176 = arith.addf %62, %160 : vector<2x32xf32>
    %177 = math.tanh %176 : vector<2x32xf32>
    %178 = arith.addf %70, %163 : vector<2x32xf32>
    %179 = arith.negf %178 : vector<2x32xf32>
    %180 = math.exp %179 : vector<2x32xf32>
    %cst_30 = arith.constant 1.000000e+00 : f32
    %181 = vector.broadcast %cst_30 : f32 to vector<2x32xf32>
    %182 = arith.addf %181, %180 : vector<2x32xf32>
    %183 = arith.divf %181, %182 : vector<2x32xf32>
    %184 = arith.mulf %175, %149 : vector<2x32xf32>
    %185 = arith.mulf %169, %177 : vector<2x32xf32>
    %186 = arith.addf %184, %185 : vector<2x32xf32>
    %187 = math.tanh %186 : vector<2x32xf32>
    %188 = arith.mulf %183, %187 : vector<2x32xf32>
    %189 = vector.extract_strided_slice %2 {offsets = [0, 0, 0], sizes = [1, 32, 32], strides = [1, 1, 1]} : vector<4x32x32xf32> to vector<1x32x32xf32>
    %190 = vector.shape_cast %189 : vector<1x32x32xf32> to vector<32x32xf32>
    %cst_31 = arith.constant dense<0.000000e+00> : vector<2x32xf32>
    %191 = tpu.matmul %188, %190, %cst_31 {dimension_numbers = #tpu.dot_dimension_numbers<[1], [0], [0], [1], [0, 0, 1, 1], [], []>} : vector<2x32xf32>, vector<32x32xf32>, vector<2x32xf32> -> vector<2x32xf32>
    %192 = vector.extract_strided_slice %2 {offsets = [1, 0, 0], sizes = [1, 32, 32], strides = [1, 1, 1]} : vector<4x32x32xf32> to vector<1x32x32xf32>
    %193 = vector.shape_cast %192 : vector<1x32x32xf32> to vector<32x32xf32>
    %cst_32 = arith.constant dense<0.000000e+00> : vector<2x32xf32>
    %194 = tpu.matmul %188, %193, %cst_32 {dimension_numbers = #tpu.dot_dimension_numbers<[1], [0], [0], [1], [0, 0, 1, 1], [], []>} : vector<2x32xf32>, vector<32x32xf32>, vector<2x32xf32> -> vector<2x32xf32>
    %195 = vector.extract_strided_slice %2 {offsets = [2, 0, 0], sizes = [1, 32, 32], strides = [1, 1, 1]} : vector<4x32x32xf32> to vector<1x32x32xf32>
    %196 = vector.shape_cast %195 : vector<1x32x32xf32> to vector<32x32xf32>
    %cst_33 = arith.constant dense<0.000000e+00> : vector<2x32xf32>
    %197 = tpu.matmul %188, %196, %cst_33 {dimension_numbers = #tpu.dot_dimension_numbers<[1], [0], [0], [1], [0, 0, 1, 1], [], []>} : vector<2x32xf32>, vector<32x32xf32>, vector<2x32xf32> -> vector<2x32xf32>
    %198 = vector.extract_strided_slice %2 {offsets = [3, 0, 0], sizes = [1, 32, 32], strides = [1, 1, 1]} : vector<4x32x32xf32> to vector<1x32x32xf32>
    %199 = vector.shape_cast %198 : vector<1x32x32xf32> to vector<32x32xf32>
    %cst_34 = arith.constant dense<0.000000e+00> : vector<2x32xf32>
    %200 = tpu.matmul %188, %199, %cst_34 {dimension_numbers = #tpu.dot_dimension_numbers<[1], [0], [0], [1], [0, 0, 1, 1], [], []>} : vector<2x32xf32>, vector<32x32xf32>, vector<2x32xf32> -> vector<2x32xf32>
    %201 = arith.addf %47, %191 : vector<2x32xf32>
    %202 = arith.negf %201 : vector<2x32xf32>
    %203 = math.exp %202 : vector<2x32xf32>
    %cst_35 = arith.constant 1.000000e+00 : f32
    %204 = vector.broadcast %cst_35 : f32 to vector<2x32xf32>
    %205 = arith.addf %204, %203 : vector<2x32xf32>
    %206 = arith.divf %204, %205 : vector<2x32xf32>
    %207 = arith.addf %55, %194 : vector<2x32xf32>
    %208 = arith.negf %207 : vector<2x32xf32>
    %209 = math.exp %208 : vector<2x32xf32>
    %cst_36 = arith.constant 1.000000e+00 : f32
    %210 = vector.broadcast %cst_36 : f32 to vector<2x32xf32>
    %211 = arith.addf %210, %209 : vector<2x32xf32>
    %212 = arith.divf %210, %211 : vector<2x32xf32>
    %213 = arith.addf %63, %197 : vector<2x32xf32>
    %214 = math.tanh %213 : vector<2x32xf32>
    %215 = arith.addf %71, %200 : vector<2x32xf32>
    %216 = arith.negf %215 : vector<2x32xf32>
    %217 = math.exp %216 : vector<2x32xf32>
    %cst_37 = arith.constant 1.000000e+00 : f32
    %218 = vector.broadcast %cst_37 : f32 to vector<2x32xf32>
    %219 = arith.addf %218, %217 : vector<2x32xf32>
    %220 = arith.divf %218, %219 : vector<2x32xf32>
    %221 = arith.mulf %212, %186 : vector<2x32xf32>
    %222 = arith.mulf %206, %214 : vector<2x32xf32>
    %223 = arith.addf %221, %222 : vector<2x32xf32>
    %224 = math.tanh %223 : vector<2x32xf32>
    %225 = arith.mulf %220, %224 : vector<2x32xf32>
    %226 = vector.extract_strided_slice %2 {offsets = [0, 0, 0], sizes = [1, 32, 32], strides = [1, 1, 1]} : vector<4x32x32xf32> to vector<1x32x32xf32>
    %227 = vector.shape_cast %226 : vector<1x32x32xf32> to vector<32x32xf32>
    %cst_38 = arith.constant dense<0.000000e+00> : vector<2x32xf32>
    %228 = tpu.matmul %225, %227, %cst_38 {dimension_numbers = #tpu.dot_dimension_numbers<[1], [0], [0], [1], [0, 0, 1, 1], [], []>} : vector<2x32xf32>, vector<32x32xf32>, vector<2x32xf32> -> vector<2x32xf32>
    %229 = vector.extract_strided_slice %2 {offsets = [1, 0, 0], sizes = [1, 32, 32], strides = [1, 1, 1]} : vector<4x32x32xf32> to vector<1x32x32xf32>
    %230 = vector.shape_cast %229 : vector<1x32x32xf32> to vector<32x32xf32>
    %cst_39 = arith.constant dense<0.000000e+00> : vector<2x32xf32>
    %231 = tpu.matmul %225, %230, %cst_39 {dimension_numbers = #tpu.dot_dimension_numbers<[1], [0], [0], [1], [0, 0, 1, 1], [], []>} : vector<2x32xf32>, vector<32x32xf32>, vector<2x32xf32> -> vector<2x32xf32>
    %232 = vector.extract_strided_slice %2 {offsets = [2, 0, 0], sizes = [1, 32, 32], strides = [1, 1, 1]} : vector<4x32x32xf32> to vector<1x32x32xf32>
    %233 = vector.shape_cast %232 : vector<1x32x32xf32> to vector<32x32xf32>
    %cst_40 = arith.constant dense<0.000000e+00> : vector<2x32xf32>
    %234 = tpu.matmul %225, %233, %cst_40 {dimension_numbers = #tpu.dot_dimension_numbers<[1], [0], [0], [1], [0, 0, 1, 1], [], []>} : vector<2x32xf32>, vector<32x32xf32>, vector<2x32xf32> -> vector<2x32xf32>
    %235 = vector.extract_strided_slice %2 {offsets = [3, 0, 0], sizes = [1, 32, 32], strides = [1, 1, 1]} : vector<4x32x32xf32> to vector<1x32x32xf32>
    %236 = vector.shape_cast %235 : vector<1x32x32xf32> to vector<32x32xf32>
    %cst_41 = arith.constant dense<0.000000e+00> : vector<2x32xf32>
    %237 = tpu.matmul %225, %236, %cst_41 {dimension_numbers = #tpu.dot_dimension_numbers<[1], [0], [0], [1], [0, 0, 1, 1], [], []>} : vector<2x32xf32>, vector<32x32xf32>, vector<2x32xf32> -> vector<2x32xf32>
    %238 = arith.addf %48, %228 : vector<2x32xf32>
    %239 = arith.negf %238 : vector<2x32xf32>
    %240 = math.exp %239 : vector<2x32xf32>
    %cst_42 = arith.constant 1.000000e+00 : f32
    %241 = vector.broadcast %cst_42 : f32 to vector<2x32xf32>
    %242 = arith.addf %241, %240 : vector<2x32xf32>
    %243 = arith.divf %241, %242 : vector<2x32xf32>
    %244 = arith.addf %56, %231 : vector<2x32xf32>
    %245 = arith.negf %244 : vector<2x32xf32>
    %246 = math.exp %245 : vector<2x32xf32>
    %cst_43 = arith.constant 1.000000e+00 : f32
    %247 = vector.broadcast %cst_43 : f32 to vector<2x32xf32>
    %248 = arith.addf %247, %246 : vector<2x32xf32>
    %249 = arith.divf %247, %248 : vector<2x32xf32>
    %250 = arith.addf %64, %234 : vector<2x32xf32>
    %251 = math.tanh %250 : vector<2x32xf32>
    %252 = arith.addf %72, %237 : vector<2x32xf32>
    %253 = arith.negf %252 : vector<2x32xf32>
    %254 = math.exp %253 : vector<2x32xf32>
    %cst_44 = arith.constant 1.000000e+00 : f32
    %255 = vector.broadcast %cst_44 : f32 to vector<2x32xf32>
    %256 = arith.addf %255, %254 : vector<2x32xf32>
    %257 = arith.divf %255, %256 : vector<2x32xf32>
    %258 = arith.mulf %249, %223 : vector<2x32xf32>
    %259 = arith.mulf %243, %251 : vector<2x32xf32>
    %260 = arith.addf %258, %259 : vector<2x32xf32>
    %261 = math.tanh %260 : vector<2x32xf32>
    %262 = arith.mulf %257, %261 : vector<2x32xf32>
    %263 = vector.extract_strided_slice %2 {offsets = [0, 0, 0], sizes = [1, 32, 32], strides = [1, 1, 1]} : vector<4x32x32xf32> to vector<1x32x32xf32>
    %264 = vector.shape_cast %263 : vector<1x32x32xf32> to vector<32x32xf32>
    %cst_45 = arith.constant dense<0.000000e+00> : vector<2x32xf32>
    %265 = tpu.matmul %262, %264, %cst_45 {dimension_numbers = #tpu.dot_dimension_numbers<[1], [0], [0], [1], [0, 0, 1, 1], [], []>} : vector<2x32xf32>, vector<32x32xf32>, vector<2x32xf32> -> vector<2x32xf32>
    %266 = vector.extract_strided_slice %2 {offsets = [1, 0, 0], sizes = [1, 32, 32], strides = [1, 1, 1]} : vector<4x32x32xf32> to vector<1x32x32xf32>
    %267 = vector.shape_cast %266 : vector<1x32x32xf32> to vector<32x32xf32>
    %cst_46 = arith.constant dense<0.000000e+00> : vector<2x32xf32>
    %268 = tpu.matmul %262, %267, %cst_46 {dimension_numbers = #tpu.dot_dimension_numbers<[1], [0], [0], [1], [0, 0, 1, 1], [], []>} : vector<2x32xf32>, vector<32x32xf32>, vector<2x32xf32> -> vector<2x32xf32>
    %269 = vector.extract_strided_slice %2 {offsets = [2, 0, 0], sizes = [1, 32, 32], strides = [1, 1, 1]} : vector<4x32x32xf32> to vector<1x32x32xf32>
    %270 = vector.shape_cast %269 : vector<1x32x32xf32> to vector<32x32xf32>
    %cst_47 = arith.constant dense<0.000000e+00> : vector<2x32xf32>
    %271 = tpu.matmul %262, %270, %cst_47 {dimension_numbers = #tpu.dot_dimension_numbers<[1], [0], [0], [1], [0, 0, 1, 1], [], []>} : vector<2x32xf32>, vector<32x32xf32>, vector<2x32xf32> -> vector<2x32xf32>
    %272 = vector.extract_strided_slice %2 {offsets = [3, 0, 0], sizes = [1, 32, 32], strides = [1, 1, 1]} : vector<4x32x32xf32> to vector<1x32x32xf32>
    %273 = vector.shape_cast %272 : vector<1x32x32xf32> to vector<32x32xf32>
    %cst_48 = arith.constant dense<0.000000e+00> : vector<2x32xf32>
    %274 = tpu.matmul %262, %273, %cst_48 {dimension_numbers = #tpu.dot_dimension_numbers<[1], [0], [0], [1], [0, 0, 1, 1], [], []>} : vector<2x32xf32>, vector<32x32xf32>, vector<2x32xf32> -> vector<2x32xf32>
    %275 = arith.addf %49, %265 : vector<2x32xf32>
    %276 = arith.negf %275 : vector<2x32xf32>
    %277 = math.exp %276 : vector<2x32xf32>
    %cst_49 = arith.constant 1.000000e+00 : f32
    %278 = vector.broadcast %cst_49 : f32 to vector<2x32xf32>
    %279 = arith.addf %278, %277 : vector<2x32xf32>
    %280 = arith.divf %278, %279 : vector<2x32xf32>
    %281 = arith.addf %57, %268 : vector<2x32xf32>
    %282 = arith.negf %281 : vector<2x32xf32>
    %283 = math.exp %282 : vector<2x32xf32>
    %cst_50 = arith.constant 1.000000e+00 : f32
    %284 = vector.broadcast %cst_50 : f32 to vector<2x32xf32>
    %285 = arith.addf %284, %283 : vector<2x32xf32>
    %286 = arith.divf %284, %285 : vector<2x32xf32>
    %287 = arith.addf %65, %271 : vector<2x32xf32>
    %288 = math.tanh %287 : vector<2x32xf32>
    %289 = arith.addf %73, %274 : vector<2x32xf32>
    %290 = arith.negf %289 : vector<2x32xf32>
    %291 = math.exp %290 : vector<2x32xf32>
    %cst_51 = arith.constant 1.000000e+00 : f32
    %292 = vector.broadcast %cst_51 : f32 to vector<2x32xf32>
    %293 = arith.addf %292, %291 : vector<2x32xf32>
    %294 = arith.divf %292, %293 : vector<2x32xf32>
    %295 = arith.mulf %286, %260 : vector<2x32xf32>
    %296 = arith.mulf %280, %288 : vector<2x32xf32>
    %297 = arith.addf %295, %296 : vector<2x32xf32>
    %298 = math.tanh %297 : vector<2x32xf32>
    %299 = arith.mulf %294, %298 : vector<2x32xf32>
    %300 = vector.extract_strided_slice %2 {offsets = [0, 0, 0], sizes = [1, 32, 32], strides = [1, 1, 1]} : vector<4x32x32xf32> to vector<1x32x32xf32>
    %301 = vector.shape_cast %300 : vector<1x32x32xf32> to vector<32x32xf32>
    %cst_52 = arith.constant dense<0.000000e+00> : vector<2x32xf32>
    %302 = tpu.matmul %299, %301, %cst_52 {dimension_numbers = #tpu.dot_dimension_numbers<[1], [0], [0], [1], [0, 0, 1, 1], [], []>} : vector<2x32xf32>, vector<32x32xf32>, vector<2x32xf32> -> vector<2x32xf32>
    %303 = vector.extract_strided_slice %2 {offsets = [1, 0, 0], sizes = [1, 32, 32], strides = [1, 1, 1]} : vector<4x32x32xf32> to vector<1x32x32xf32>
    %304 = vector.shape_cast %303 : vector<1x32x32xf32> to vector<32x32xf32>
    %cst_53 = arith.constant dense<0.000000e+00> : vector<2x32xf32>
    %305 = tpu.matmul %299, %304, %cst_53 {dimension_numbers = #tpu.dot_dimension_numbers<[1], [0], [0], [1], [0, 0, 1, 1], [], []>} : vector<2x32xf32>, vector<32x32xf32>, vector<2x32xf32> -> vector<2x32xf32>
    %306 = vector.extract_strided_slice %2 {offsets = [2, 0, 0], sizes = [1, 32, 32], strides = [1, 1, 1]} : vector<4x32x32xf32> to vector<1x32x32xf32>
    %307 = vector.shape_cast %306 : vector<1x32x32xf32> to vector<32x32xf32>
    %cst_54 = arith.constant dense<0.000000e+00> : vector<2x32xf32>
    %308 = tpu.matmul %299, %307, %cst_54 {dimension_numbers = #tpu.dot_dimension_numbers<[1], [0], [0], [1], [0, 0, 1, 1], [], []>} : vector<2x32xf32>, vector<32x32xf32>, vector<2x32xf32> -> vector<2x32xf32>
    %309 = vector.extract_strided_slice %2 {offsets = [3, 0, 0], sizes = [1, 32, 32], strides = [1, 1, 1]} : vector<4x32x32xf32> to vector<1x32x32xf32>
    %310 = vector.shape_cast %309 : vector<1x32x32xf32> to vector<32x32xf32>
    %cst_55 = arith.constant dense<0.000000e+00> : vector<2x32xf32>
    %311 = tpu.matmul %299, %310, %cst_55 {dimension_numbers = #tpu.dot_dimension_numbers<[1], [0], [0], [1], [0, 0, 1, 1], [], []>} : vector<2x32xf32>, vector<32x32xf32>, vector<2x32xf32> -> vector<2x32xf32>
    %312 = arith.addf %50, %302 : vector<2x32xf32>
    %313 = arith.negf %312 : vector<2x32xf32>
    %314 = math.exp %313 : vector<2x32xf32>
    %cst_56 = arith.constant 1.000000e+00 : f32
    %315 = vector.broadcast %cst_56 : f32 to vector<2x32xf32>
    %316 = arith.addf %315, %314 : vector<2x32xf32>
    %317 = arith.divf %315, %316 : vector<2x32xf32>
    %318 = arith.addf %58, %305 : vector<2x32xf32>
    %319 = arith.negf %318 : vector<2x32xf32>
    %320 = math.exp %319 : vector<2x32xf32>
    %cst_57 = arith.constant 1.000000e+00 : f32
    %321 = vector.broadcast %cst_57 : f32 to vector<2x32xf32>
    %322 = arith.addf %321, %320 : vector<2x32xf32>
    %323 = arith.divf %321, %322 : vector<2x32xf32>
    %324 = arith.addf %66, %308 : vector<2x32xf32>
    %325 = math.tanh %324 : vector<2x32xf32>
    %326 = arith.addf %74, %311 : vector<2x32xf32>
    %327 = arith.negf %326 : vector<2x32xf32>
    %328 = math.exp %327 : vector<2x32xf32>
    %cst_58 = arith.constant 1.000000e+00 : f32
    %329 = vector.broadcast %cst_58 : f32 to vector<2x32xf32>
    %330 = arith.addf %329, %328 : vector<2x32xf32>
    %331 = arith.divf %329, %330 : vector<2x32xf32>
    %332 = arith.mulf %323, %297 : vector<2x32xf32>
    %333 = arith.mulf %317, %325 : vector<2x32xf32>
    %334 = arith.addf %332, %333 : vector<2x32xf32>
    %335 = math.tanh %334 : vector<2x32xf32>
    %336 = arith.mulf %331, %335 : vector<2x32xf32>
    %337 = vector.extract_strided_slice %2 {offsets = [0, 0, 0], sizes = [1, 32, 32], strides = [1, 1, 1]} : vector<4x32x32xf32> to vector<1x32x32xf32>
    %338 = vector.shape_cast %337 : vector<1x32x32xf32> to vector<32x32xf32>
    %cst_59 = arith.constant dense<0.000000e+00> : vector<2x32xf32>
    %339 = tpu.matmul %336, %338, %cst_59 {dimension_numbers = #tpu.dot_dimension_numbers<[1], [0], [0], [1], [0, 0, 1, 1], [], []>} : vector<2x32xf32>, vector<32x32xf32>, vector<2x32xf32> -> vector<2x32xf32>
    %340 = vector.extract_strided_slice %2 {offsets = [1, 0, 0], sizes = [1, 32, 32], strides = [1, 1, 1]} : vector<4x32x32xf32> to vector<1x32x32xf32>
    %341 = vector.shape_cast %340 : vector<1x32x32xf32> to vector<32x32xf32>
    %cst_60 = arith.constant dense<0.000000e+00> : vector<2x32xf32>
    %342 = tpu.matmul %336, %341, %cst_60 {dimension_numbers = #tpu.dot_dimension_numbers<[1], [0], [0], [1], [0, 0, 1, 1], [], []>} : vector<2x32xf32>, vector<32x32xf32>, vector<2x32xf32> -> vector<2x32xf32>
    %343 = vector.extract_strided_slice %2 {offsets = [2, 0, 0], sizes = [1, 32, 32], strides = [1, 1, 1]} : vector<4x32x32xf32> to vector<1x32x32xf32>
    %344 = vector.shape_cast %343 : vector<1x32x32xf32> to vector<32x32xf32>
    %cst_61 = arith.constant dense<0.000000e+00> : vector<2x32xf32>
    %345 = tpu.matmul %336, %344, %cst_61 {dimension_numbers = #tpu.dot_dimension_numbers<[1], [0], [0], [1], [0, 0, 1, 1], [], []>} : vector<2x32xf32>, vector<32x32xf32>, vector<2x32xf32> -> vector<2x32xf32>
    %346 = vector.extract_strided_slice %2 {offsets = [3, 0, 0], sizes = [1, 32, 32], strides = [1, 1, 1]} : vector<4x32x32xf32> to vector<1x32x32xf32>
    %347 = vector.shape_cast %346 : vector<1x32x32xf32> to vector<32x32xf32>
    %cst_62 = arith.constant dense<0.000000e+00> : vector<2x32xf32>
    %348 = tpu.matmul %336, %347, %cst_62 {dimension_numbers = #tpu.dot_dimension_numbers<[1], [0], [0], [1], [0, 0, 1, 1], [], []>} : vector<2x32xf32>, vector<32x32xf32>, vector<2x32xf32> -> vector<2x32xf32>
    %349 = arith.addf %51, %339 : vector<2x32xf32>
    %350 = arith.negf %349 : vector<2x32xf32>
    %351 = math.exp %350 : vector<2x32xf32>
    %cst_63 = arith.constant 1.000000e+00 : f32
    %352 = vector.broadcast %cst_63 : f32 to vector<2x32xf32>
    %353 = arith.addf %352, %351 : vector<2x32xf32>
    %354 = arith.divf %352, %353 : vector<2x32xf32>
    %355 = arith.addf %59, %342 : vector<2x32xf32>
    %356 = arith.negf %355 : vector<2x32xf32>
    %357 = math.exp %356 : vector<2x32xf32>
    %cst_64 = arith.constant 1.000000e+00 : f32
    %358 = vector.broadcast %cst_64 : f32 to vector<2x32xf32>
    %359 = arith.addf %358, %357 : vector<2x32xf32>
    %360 = arith.divf %358, %359 : vector<2x32xf32>
    %361 = arith.addf %67, %345 : vector<2x32xf32>
    %362 = math.tanh %361 : vector<2x32xf32>
    %363 = arith.addf %75, %348 : vector<2x32xf32>
    %364 = arith.negf %363 : vector<2x32xf32>
    %365 = math.exp %364 : vector<2x32xf32>
    %cst_65 = arith.constant 1.000000e+00 : f32
    %366 = vector.broadcast %cst_65 : f32 to vector<2x32xf32>
    %367 = arith.addf %366, %365 : vector<2x32xf32>
    %368 = arith.divf %366, %367 : vector<2x32xf32>
    %369 = arith.mulf %360, %334 : vector<2x32xf32>
    %370 = arith.mulf %354, %362 : vector<2x32xf32>
    %371 = arith.addf %369, %370 : vector<2x32xf32>
    %372 = math.tanh %371 : vector<2x32xf32>
    %373 = arith.mulf %368, %372 : vector<2x32xf32>
    %c0_66 = arith.constant 0 : index
    %c0_67 = arith.constant 0 : index
    %374 = vector.load %arg7[%c0_66, %c0_67] : memref<2x32xf32, #tpu.memory_space<vmem>>, vector<2x32xf32>
    tpu.vector_store %arg7[%c0_66, %c0_67], %373 {strides = array<i32>} : memref<2x32xf32, #tpu.memory_space<vmem>>, vector<2x32xf32>,
    %c0_68 = arith.constant 0 : index
    %c0_69 = arith.constant 0 : index
    %375 = vector.load %arg8[%c0_68, %c0_69] : memref<2x32xf32, #tpu.memory_space<vmem>>, vector<2x32xf32>
    tpu.vector_store %arg8[%c0_68, %c0_69], %371 {strides = array<i32>} : memref<2x32xf32, #tpu.memory_space<vmem>>, vector<2x32xf32>,
    %c0_70 = arith.constant 0 : index
    %c0_71 = arith.constant 0 : index
    %376 = vector.load %arg4[%c0_70, %c0_71] : memref<1x32xf32, #tpu.memory_space<vmem>>, vector<1x32xf32>
    %377 = vector.broadcast %376 : vector<1x32xf32> to vector<2x32xf32>
    %378 = arith.mulf %373, %377 : vector<2x32xf32>
    %cst_72 = arith.constant dense<0.000000e+00> : vector<2xf32>
    %379 = vector.multi_reduction <add>, %378, %cst_72 [1] : vector<2x32xf32> to vector<2xf32>
    %380 = vector.shape_cast %379 : vector<2xf32> to vector<2x1xf32>
    %c0_73 = arith.constant 0 : index
    %381 = memref.load %arg5[%c0_73] : memref<1xf32, #tpu.memory_space<smem>>
    %382 = vector.broadcast %381 : f32 to vector<2x1xf32>
    %383 = arith.addf %380, %382 : vector<2x1xf32>
    %c0_74 = arith.constant 0 : index
    %c0_75 = arith.constant 0 : index
    %384 = vector.load %arg6[%c0_74, %c0_75] : memref<2x1xf32, #tpu.memory_space<vmem>>, vector<2x1xf32>
    tpu.vector_store %arg6[%c0_74, %c0_75], %383 {strides = array<i32>} : memref<2x1xf32, #tpu.memory_space<vmem>>, vector<2x1xf32>,
    return
  }
}

</mosaic_0001>

<bundles_post_ra>
// kernel: mylstm_forward.1
= control target key start
LH: loop header
LB: loop body
LE: loop exit
PB: predicated region body
PF: predicated region fallthrough
CT: control target
= control target key end

     0   :  { %15 = vsyncpa [#allocation4], 0  ;;  %v3700_v3 = vmov 0.0|0.0   ;;  %vm3701_vm0 = vmmov 0   ;;  %v3702_v11 = vmov 0.0   ;;  %v3703_v13 = vmov 0   ;;  %s4165_s0 = inlined_call_operand.vmem [shape: f32[16,1], index: 0, kind: input, shape index: {}]   ;;  %s4166_s1 = inlined_call_operand.vmem [shape: f32[4,1,32], index: 1, kind: input, shape index: {}]   ;;  %s4167_s2 = inlined_call_operand.vmem [shape: f32[4,32,32], index: 2, kind: input, shape index: {}]   ;;  %s4168_s3 = inlined_call_operand.vmem [shape: f32[4,32], index: 3, kind: input, shape index: {}]   ;;  %s4169_s4 = inlined_call_operand.vmem [shape: f32[1,32], index: 4, kind: input, shape index: {}]   ;;  %s4170_s5 = inlined_call_operand.<no memory space> [shape: f32[1], index: 5, kind: input, shape index: {}]   ;;  %s4171_s6 = inlined_call_operand.vmem [shape: f32[2,1], index: 6, kind: output, shape index: {0}]   ;;  %s4172_s7 = inlined_call_operand.hbm [shape: f32[2,32], index: 7, kind: output, shape index: {1}]   ;;  %s4173_s8 = inlined_call_operand.hbm [shape: f32[2,32], index: 8, kind: output, shape index: {2}]  }
   0x1   :  { %v35_v0 = vld [vmem:[%s4167_s2] sm:$0xff]  ;;  %v36_v1 = vld [vmem:[%s4167_s2 + $0x8] sm:$0xff]  ;;  %3325 = vmatprep.subr.bf16.mxu0 %v3700_v3  ;;  %3331 = vmatprep.subr.bf16.mxu1 %v3700_v3  ;;  %v37_v6 = vld [vmem:[%s4167_s2 + $0x10] sm:$0xff] }
   0x2   :  { %v39_v2 = vld [vmem:[%s4167_s2 + $0x20] sm:$0xff]  ;;  %v3762_v4 = vpack.c.bf16 %v36_v1, %v35_v0  ;;  %v40_v5 = vld [vmem:[%s4167_s2 + $0x28] sm:$0xff]  ;;  %v38_v7 = vld [vmem:[%s4167_s2 + $0x18] sm:$0xff]  ;;  %2981 = vmatprep.mubr.msk.f32.mxu0 %vm3701_vm0, %v3702_v11  ;;  %2992 = vmatprep.mubr.msk.f32.mxu1 %vm3701_vm0, %v3702_v11 }
   0x3   :  { %v3773_v8 = vpack.c.bf16 %v40_v5, %v39_v2  ;;  %v41_v9 = vld [vmem:[%s4167_s2 + $0x30] sm:$0xff]  ;;  %v42_v10 = vld [vmem:[%s4167_s2 + $0x38] sm:$0xff]  ;;  %v3786_v12 = vpack.c.bf16 %v38_v7, %v37_v6  ;;  %3523 = vset.pattern.permute.xlu0 %v3703_v13  ;;  %v43_v15 = vld [vmem:[%s4167_s2 + $0x40] sm:$0xff] }
   0x4   :  { %3327 = vmatpush3.bf16.msra.mxu0 %v3762_v4  ;;  %v3790_v14 = vpack.c.bf16 %v42_v10, %v41_v9  ;;  %v44_v16 = vld [vmem:[%s4167_s2 + $0x48] sm:$0xff]  ;;  %v47_v17 = vld [vmem:[%s4167_s2 + $0x60] sm:$0xff] }
   0x5   :  { %3333 = vmatpush3.bf16.msra.mxu1 %v3773_v8  ;;  %3328 = vmatprep.subr.bf16.mxu0 %v3700_v3  ;;  %v48_v18 = vld [vmem:[%s4167_s2 + $0x68] sm:$0xff]  ;;  %v29_v19 = vld [vmem:[%s4165_s0] sm:$0xff]  ;;  %v3809_v20 = vpack.c.bf16 %v44_v16, %v43_v15 }
   0x6   :  { %3334 = vmatprep.subr.bf16.mxu1 %v3700_v3  ;;  %54 = vperm.xlu0 %3523, %v29_v19   ;;  %v30_v21 = vld [vmem:[%s4165_s0 + $0x8] sm:$0xff] }
   0x8   :  { %3330 = vmatpush3.bf16.msra.mxu0 %v3786_v12 }
   0x9   :  { %16 = vsyncpa [#allocation6], 0  ;;  %3336 = vmatpush3.bf16.msra.mxu1 %v3790_v14  ;;  %3337 = vmatprep.subr.bf16.mxu0 %v3700_v3  ;;  %v3816_v22 = vpack.c.bf16 %v48_v18, %v47_v17  ;;  %v45_v23 = vld [vmem:[%s4167_s2 + $0x50] sm:$0xff]  ;;  %v46_v24 = vld [vmem:[%s4167_s2 + $0x58] sm:$0xff]  ;;  %v70_v29 = vlaneseq  ;;  %vm118_vm1 = vcmask 261120   ;;  %vm2705_vm2 = vcmask 261126  }
   0xa   :  { %3343 = vmatprep.subr.bf16.mxu1 %v3700_v3  ;;  %v49_v25 = vld [vmem:[%s4167_s2 + $0x70] sm:$0xff]  ;;  %v50_v26 = vld [vmem:[%s4167_s2 + $0x78] sm:$0xff]  ;;  %59 = vperm.xlu0 %3523, %v30_v21   ;;  %v3834_v27 = vpack.c.bf16 %v46_v24, %v45_v23  ;;  %v51_v36 = vld [vmem:[%s4168_s3] sm:$0xf]  ;;  %s3704_s27 = smov [#allocation3]   ;;  %s3705_s29 = smov [#allocation5]  }
   0xb   :  { %2982 = vmatmul.mubr.f32.vlgmr.msra.gmra.mrb[0].mxu0 %v3702_v11  ;;  %v3838_v28 = vpack.c.bf16 %v50_v26, %v49_v25  ;;  %v71_v30 = vshrl.u32 %v70_v29, 7  ;;  %v2756_v37 = vld [vmem:[%s4166_s1] ss:$0 sm:$0xff]  ;;  %v2757_v38 = vld [vmem:[%s4166_s1 + $0x1] ss:$0 sm:$0xff]  ;;  %s2732_s28 = sshll.u32 %s3704_s27, 4  ;;  %s2733_s28 = int_to_ptr.vmem [resolvable:$true] %s2732_s28 }
   0xc   :  { %2993 = vmatmul.mubr.f32.vlgmr.msra.gmra.mrb[0].mxu1 %v3702_v11  ;;  %3339 = vmatpush3.bf16.msra.mxu0 %v3809_v20  ;;  %v2758_v39 = vld [vmem:[%s4166_s1 + $0x2] ss:$0 sm:$0xff]  ;;  %v2759_v40 = vld [vmem:[%s4166_s1 + $0x3] ss:$0 sm:$0xff]  ;;  %s2742_s30 = sshll.u32 %s3705_s29, 4  ;;  %s3652_s9 = scalar_lea.vmem %s2733_s28, 32  ;;  %s2743_s30 = int_to_ptr.vmem [resolvable:$true] %s2742_s30 }
   0xd   :  { %3345 = vmatpush3.bf16.msra.mxu1 %v3816_v22  ;;  %3340 = vmatprep.subr.bf16.mxu0 %v3700_v3  ;;  %v72_v31 = vsub.s32 0, %v71_v30  ;;  %v86_v32 = vsub.s32 1, %v71_v30  ;;  %v100_v33 = vsub.s32 2, %v71_v30  ;;  %v114_v34 = vsub.s32 3, %v71_v30  ;;  %p3653_p0 = scmp.ne.s32.totalorder %s2733_s28, %s3652_s9  ;;  %p3657_p1 = scmp.lt.s32.totalorder %s2733_s28, %s2733_s28 }
   0xe   :  { %3346 = vmatprep.subr.bf16.mxu1 %v3700_v3  ;;  %3003 = vmatprep.mubr.msk.f32.mxu0 %vm3701_vm0, %v3702_v11  ;;  %p3658_p2 = scmp.lt.s32.totalorder %s3652_s9, %s3652_s9 }
   0xf   :  { %3014 = vmatprep.mubr.msk.f32.mxu1 %vm3701_vm0, %v3702_v11  ;;  %v73_v41 = vrot.slane %v51_v36, %v72_v31  ;;  %v87_v42 = vrot.slane %v51_v36, %v86_v32  ;;  %v101_v43 = vrot.slane %v51_v36, %v100_v33  ;;  %v115_v44 = vrot.slane %v51_v36, %v114_v34 }
  0x10   :  { %3342 = vmatpush3.bf16.msra.mxu0 %v3834_v27  ;;  %p3659_p3 = por %p3658_p2, %p3657_p1 }
  0x11   :  { %3348 = vmatpush3.bf16.msra.mxu1 %v3838_v28  ;;  %3349 = vmatprep.subr.bf16.mxu0 %v3700_v3 }
  0x12   :  { %3355 = vmatprep.subr.bf16.mxu1 %v3700_v3  ;;  %p3660_p4 = pnand %p3659_p3, %p3653_p0 }
  0x13   :  { %3004 = vmatmul.mubr.f32.vlgmr.msra.gmra.mrb[2].mxu0 %v3702_v11 }
  0x14   :  { %3015 = vmatmul.mubr.f32.vlgmr.msra.gmra.mrb[2].mxu1 %v3702_v11  ;;  %3351 = vmatpush3.bf16.msra.mxu0 %v3762_v4 }
  0x15   :  { %3357 = vmatpush3.bf16.msra.mxu1 %v3773_v8  ;;  %3352 = vmatprep.subr.bf16.mxu0 %v3700_v3 }
  0x16   :  { %3358 = vmatprep.subr.bf16.mxu1 %v3700_v3  ;;  %3025 = vmatprep.mubr.msk.f32.mxu0 %vm3701_vm0, %v3702_v11 }
  0x17   :  { %3036 = vmatprep.mubr.msk.f32.mxu1 %vm3701_vm0, %v3702_v11 }
  0x18   :  { %3354 = vmatpush3.bf16.msra.mxu0 %v3786_v12 }
  0x19   :  { %3360 = vmatpush3.bf16.msra.mxu1 %v3790_v14  ;;  %3361 = vmatprep.subr.bf16.mxu0 %v3700_v3 }
  0x1a   :  { %3367 = vmatprep.subr.bf16.mxu1 %v3700_v3 }
  0x85   :  { %v55_v35 = vpop.permute.xlu0 %54 }
  0x86   :  { %v68_v54 = vmul.f32 %v2756_v37, %v55_v35  ;;  %v82_v55 = vmul.f32 %v2757_v38, %v55_v35  ;;  %v110_v1 = vmul.f32 %v2759_v40, %v55_v35  ;;  %v96_v5 = vmul.f32 %v2758_v39, %v55_v35 }
  0x88   :  { %v3886_v56 = vadd.f32 %v73_v41, %v68_v54  ;;  %v3888_v57 = vadd.f32 %v87_v42, %v82_v55  ;;  %v3892_v6 = vadd.f32 %v115_v44, %v110_v1  ;;  %v3895_v16 = vadd.f32 %v101_v43, %v96_v5 }
  0x89   :  { %v60_v45 = vpop.permute.xlu0 %59 }
  0x8a   :  { %v69_v46 = vmul.f32 %v2756_v37, %v60_v45  ;;  %v83_v47 = vmul.f32 %v2757_v38, %v60_v45  ;;  %v97_v48 = vmul.f32 %v2758_v39, %v60_v45  ;;  %v111_v49 = vmul.f32 %v2759_v40, %v60_v45 }
  0x8c   :  { %v3878_v50 = vadd.f32 %v73_v41, %v69_v46  ;;  %v3880_v51 = vadd.f32 %v87_v42, %v83_v47  ;;  %v3882_v52 = vadd.f32 %v101_v43, %v97_v48  ;;  %v3884_v53 = vadd.f32 %v115_v44, %v111_v49 }
  0xde   :  { %v188_v58 = vpop.f32.mrb[0].mxu0 }
  0xdf   :  { %v402_v59 = vadd.f32 %v188_v58, %v3886_v56  ;;  %v258_v60 = vpop.f32.mrb[0].mxu1  ;;  %v2983_v61 = vpop.f32.mrb[1].mxu0 }
  0xe0   :  { %v409_v62 = vadd.f32 %v258_v60, %v3888_v57  ;;  %v2994_v63 = vpop.f32.mrb[1].mxu1 }
  0xe1   :  { %v2760_v0 = vmul.f32 -1.442695, %v402_v59 }
  0xe2   :  { %v2761_v2 = vmul.f32 -1.442695, %v409_v62 }
  0xe3   :  { %3524 = vpow2.f32 %v2760_v0 }
  0xe4   :  { %3526 = vpow2.f32 %v2761_v2 }
  0xe6   :  { %v328_v7 = vpop.f32.mrb[2].mxu0 }
  0xe7   :  { %v398_v9 = vpop.f32.mrb[2].mxu1  ;;  %v3005_v10 = vpop.f32.mrb[3].mxu0  ;;  %v416_v18 = vadd.f32 %v328_v7, %v3895_v16 }
  0xe8   :  { %v418_v13 = vadd.f32 %v398_v9, %v3892_v6  ;;  %v3016_v15 = vpop.f32.mrb[3].mxu1 }
  0xea   :  { %v2762_v17 = vmul.f32 -1.442695, %v418_v13 }
  0xec   :  { %3528 = vpow2.f32 %v2762_v17 }
  0xed   :  { %v3525_v19 = vpop.eup %3524  ;;  %3530 = vtanh.f32 %v416_v18 }
  0xee   :  { %v3527_v21 = vpop.eup %3526  ;;  %v406_v23 = vadd.f32 1.0, %v3525_v19 }
  0xef   :  { %v413_v24 = vadd.f32 1.0, %v3527_v21 }
  0xf0   :  { %3532 = vrcp.f32 %v406_v23 }
  0xf1   :  { %3534 = vrcp.f32 %v413_v24 }
  0xf6   :  { %v3529_v25 = vpop.eup %3528 }
  0xf7   :  { %v3531_v26 = vpop.eup %3530  ;;  %v422_v32 = vadd.f32 1.0, %v3529_v25 }
  0xf9   :  { %3536 = vrcp.f32 %v422_v32 }
  0xfa   :  { %v3533_v29 = vpop.eup %3532 }
  0xfb   :  { %v3535_v30 = vpop.eup %3534  ;;  %v426_v31 = vmul.f32 %v3533_v29, %v3531_v26 }
  0xfc   :  { %v425_v33 = vmul.f32 0.0, %v3535_v30 }
  0xfe   :  { %v3898_v34 = vadd.f32 %v426_v31, %v425_v33 }
 0x100   :  { %3538 = vtanh.f32 %v3898_v34  ;;  %v749_v10 = vrot.slane %v3898_v34, 6 }
 0x103   :  { %v3537_v35 = vpop.eup %3536 }
 0x10a   :  { %v3539_v36 = vpop.eup %3538 }
 0x10b   :  { %v429_v37 = vmul.f32 %v3539_v36, %v3537_v35 }
 0x10d   :  { %3026 = vmatmul.mubr.msk.f32.vlgmr.msra.gmra.mrb[4].mxu0 %vm118_vm1, %v429_v37  ;;  %3037 = vmatmul.mubr.msk.f32.vlgmr.msra.gmra.mrb[4].mxu1 %vm118_vm1, %v429_v37 }
 0x10e   :  { %3363 = vmatpush3.bf16.msra.mxu0 %v3809_v20  ;;  %3369 = vmatpush3.bf16.msra.mxu1 %v3816_v22 }
 0x10f   :  { %3364 = vmatprep.subr.bf16.mxu0 %v3700_v3  ;;  %3370 = vmatprep.subr.bf16.mxu1 %v3700_v3 }
 0x110   :  { %3047 = vmatprep.mubr.msk.f32.mxu0 %vm3701_vm0, %v3702_v11  ;;  %3058 = vmatprep.mubr.msk.f32.mxu1 %vm3701_vm0, %v3702_v11 }
 0x112   :  { %3366 = vmatpush3.bf16.msra.mxu0 %v3834_v27  ;;  %3372 = vmatpush3.bf16.msra.mxu1 %v3838_v28 }
 0x113   :  { %3373 = vmatprep.subr.bf16.mxu0 %v3700_v3  ;;  %3379 = vmatprep.subr.bf16.mxu1 %v3700_v3 }
 0x115   :  { %3048 = vmatmul.mubr.msk.f32.vlgmr.msra.gmra.mrb[6].mxu0 %vm118_vm1, %v429_v37  ;;  %3059 = vmatmul.mubr.msk.f32.vlgmr.msra.gmra.mrb[6].mxu1 %vm118_vm1, %v429_v37 }
 0x116   :  { %3375 = vmatpush3.bf16.msra.mxu0 %v3762_v4  ;;  %3381 = vmatpush3.bf16.msra.mxu1 %v3773_v8 }
 0x117   :  { %3376 = vmatprep.subr.bf16.mxu0 %v3700_v3  ;;  %3382 = vmatprep.subr.bf16.mxu1 %v3700_v3 }
 0x118   :  { %3069 = vmatprep.mubr.msk.f32.mxu0 %vm3701_vm0, %v3702_v11  ;;  %3080 = vmatprep.mubr.msk.f32.mxu1 %vm3701_vm0, %v3702_v11 }
 0x11a   :  { %3378 = vmatpush3.bf16.msra.mxu0 %v3786_v12  ;;  %3384 = vmatpush3.bf16.msra.mxu1 %v3790_v14 }
 0x11b   :  { %3385 = vmatprep.subr.bf16.mxu0 %v3700_v3  ;;  %3391 = vmatprep.subr.bf16.mxu1 %v3700_v3 }
 0x1e0   :  { %v499_v38 = vpop.f32.mrb[4].mxu0  ;;  %v569_v39 = vpop.f32.mrb[4].mxu1 }
 0x1e1   :  { %v714_v40 = vrot.slane %v499_v38, 6  ;;  %v724_v41 = vrot.slane %v569_v39, 6  ;;  %v3027_v42 = vpop.f32.mrb[5].mxu0  ;;  %v3038_v43 = vpop.f32.mrb[5].mxu1 }
 0x1e3   :  { %v716_v44 = vadd.f32 %v714_v40, %v3886_v56  ;;  %v726_v45 = vadd.f32 %v724_v41, %v3888_v57 }
 0x1e5   :  { %v2767_v46 = vmul.f32 -1.442695, %v716_v44  ;;  %v2768_v47 = vmul.f32 -1.442695, %v726_v45 }
 0x1e7   :  { %3540 = vpow2.f32 %v2767_v46 }
 0x1e8   :  { %3542 = vpow2.f32 %v2768_v47  ;;  %v639_v48 = vpop.f32.mrb[6].mxu0  ;;  %v709_v49 = vpop.f32.mrb[6].mxu1 }
 0x1e9   :  { %v739_v54 = vrot.slane %v709_v49, 6  ;;  %v3049_v55 = vpop.f32.mrb[7].mxu0  ;;  %v3060_v58 = vpop.f32.mrb[7].mxu1  ;;  %v734_v59 = vrot.slane %v639_v48, 6 }
 0x1eb   :  { %v741_v60 = vadd.f32 %v739_v54, %v3892_v6  ;;  %v736_v62 = vadd.f32 %v734_v59, %v3895_v16 }
 0x1ed   :  { %v2769_v61 = vmul.f32 -1.442695, %v741_v60 }
 0x1ef   :  { %3544 = vpow2.f32 %v2769_v61 }
 0x1f0   :  { %3546 = vtanh.f32 %v736_v62 }
 0x1f1   :  { %v3541_v63 = vpop.eup %3540 }
 0x1f2   :  { %v3543_v0 = vpop.eup %3542  ;;  %v720_v1 = vadd.f32 1.0, %v3541_v63 }
 0x1f3   :  { %v730_v2 = vadd.f32 1.0, %v3543_v0 }
 0x1f4   :  { %3548 = vrcp.f32 %v720_v1 }
 0x1f5   :  { %3550 = vrcp.f32 %v730_v2 }
 0x1f9   :  { %v3545_v5 = vpop.eup %3544 }
 0x1fa   :  { %v3547_v7 = vpop.eup %3546  ;;  %v745_v17 = vadd.f32 1.0, %v3545_v5 }
 0x1fc   :  { %3552 = vrcp.f32 %v745_v17 }
 0x1fe   :  { %v3549_v9 = vpop.eup %3548 }
 0x1ff   :  { %v3551_v13 = vpop.eup %3550  ;;  %v752_v15 = vmul.f32 %v3549_v9, %v3547_v7 }
 0x200   :  { %v751_v18 = vmul.f32 %v3551_v13, %v749_v10 }
 0x202   :  { %v3934_v19 = vadd.f32 %v752_v15, %v751_v18 }
 0x204   :  { %3554 = vtanh.f32 %v3934_v19  ;;  %v1076_v60 = vrot.slane %v3934_v19, 6 }
 0x206   :  { %v3553_v21 = vpop.eup %3552 }
 0x20e   :  { %v3555_v23 = vpop.eup %3554 }
 0x20f   :  { %v755_v24 = vmul.f32 %v3555_v23, %v3553_v21 }
 0x211   :  { %v757_v25 = vrot.slane %v755_v24, 2 }
 0x213   :  { %3070 = vmatmul.mubr.msk.f32.vlgmr.msra.gmra.mrb[8].mxu0 %vm118_vm1, %v757_v25  ;;  %3081 = vmatmul.mubr.msk.f32.vlgmr.msra.gmra.mrb[8].mxu1 %vm118_vm1, %v757_v25 }
 0x214   :  { %3387 = vmatpush3.bf16.msra.mxu0 %v3809_v20  ;;  %3393 = vmatpush3.bf16.msra.mxu1 %v3816_v22 }
 0x215   :  { %3388 = vmatprep.subr.bf16.mxu0 %v3700_v3  ;;  %3394 = vmatprep.subr.bf16.mxu1 %v3700_v3 }
 0x216   :  { %3091 = vmatprep.mubr.msk.f32.mxu0 %vm3701_vm0, %v3702_v11  ;;  %3102 = vmatprep.mubr.msk.f32.mxu1 %vm3701_vm0, %v3702_v11 }
 0x218   :  { %3390 = vmatpush3.bf16.msra.mxu0 %v3834_v27  ;;  %3396 = vmatpush3.bf16.msra.mxu1 %v3838_v28 }
 0x219   :  { %3397 = vmatprep.subr.bf16.mxu0 %v3700_v3  ;;  %3403 = vmatprep.subr.bf16.mxu1 %v3700_v3 }
 0x21b   :  { %3092 = vmatmul.mubr.msk.f32.vlgmr.msra.gmra.mrb[10].mxu0 %vm118_vm1, %v757_v25  ;;  %3103 = vmatmul.mubr.msk.f32.vlgmr.msra.gmra.mrb[10].mxu1 %vm118_vm1, %v757_v25 }
 0x21c   :  { %3399 = vmatpush3.bf16.msra.mxu0 %v3762_v4  ;;  %3405 = vmatpush3.bf16.msra.mxu1 %v3773_v8 }
 0x21d   :  { %3400 = vmatprep.subr.bf16.mxu0 %v3700_v3  ;;  %3406 = vmatprep.subr.bf16.mxu1 %v3700_v3 }
 0x21e   :  { %3113 = vmatprep.mubr.msk.f32.mxu0 %vm3701_vm0, %v3702_v11  ;;  %3124 = vmatprep.mubr.msk.f32.mxu1 %vm3701_vm0, %v3702_v11 }
 0x220   :  { %3402 = vmatpush3.bf16.msra.mxu0 %v3786_v12  ;;  %3408 = vmatpush3.bf16.msra.mxu1 %v3790_v14 }
 0x221   :  { %3409 = vmatprep.subr.bf16.mxu0 %v3700_v3  ;;  %3415 = vmatprep.subr.bf16.mxu1 %v3700_v3 }
 0x2e6   :  { %v826_v26 = vpop.f32.mrb[8].mxu0  ;;  %v896_v29 = vpop.f32.mrb[8].mxu1 }
 0x2e7   :  { %v1041_v30 = vrot.slane %v826_v26, 4  ;;  %v1051_v31 = vrot.slane %v896_v29, 4  ;;  %v3071_v32 = vpop.f32.mrb[9].mxu0  ;;  %v3082_v33 = vpop.f32.mrb[9].mxu1 }
 0x2e9   :  { %v1043_v34 = vadd.f32 %v1041_v30, %v3886_v56  ;;  %v1053_v35 = vadd.f32 %v1051_v31, %v3888_v57 }
 0x2eb   :  { %v2774_v36 = vmul.f32 -1.442695, %v1043_v34  ;;  %v2775_v37 = vmul.f32 -1.442695, %v1053_v35 }
 0x2ed   :  { %3556 = vpow2.f32 %v2774_v36 }
 0x2ee   :  { %3558 = vpow2.f32 %v2775_v37  ;;  %v966_v38 = vpop.f32.mrb[10].mxu0  ;;  %v1036_v39 = vpop.f32.mrb[10].mxu1 }
 0x2ef   :  { %v1066_v40 = vrot.slane %v1036_v39, 4  ;;  %v3093_v41 = vpop.f32.mrb[11].mxu0  ;;  %v3104_v42 = vpop.f32.mrb[11].mxu1  ;;  %v1061_v43 = vrot.slane %v966_v38, 4 }
 0x2f1   :  { %v1068_v44 = vadd.f32 %v1066_v40, %v3892_v6  ;;  %v1063_v46 = vadd.f32 %v1061_v43, %v3895_v16 }
 0x2f3   :  { %v2776_v45 = vmul.f32 -1.442695, %v1068_v44 }
 0x2f5   :  { %3560 = vpow2.f32 %v2776_v45 }
 0x2f6   :  { %3562 = vtanh.f32 %v1063_v46 }
 0x2f7   :  { %v3557_v47 = vpop.eup %3556 }
 0x2f8   :  { %v3559_v48 = vpop.eup %3558  ;;  %v1047_v49 = vadd.f32 1.0, %v3557_v47 }
 0x2f9   :  { %v1057_v54 = vadd.f32 1.0, %v3559_v48 }
 0x2fa   :  { %3564 = vrcp.f32 %v1047_v49 }
 0x2fb   :  { %3566 = vrcp.f32 %v1057_v54 }
 0x2ff   :  { %v3561_v55 = vpop.eup %3560 }
 0x300   :  { %v3563_v58 = vpop.eup %3562  ;;  %v1072_v63 = vadd.f32 1.0, %v3561_v55 }
 0x302   :  { %3568 = vrcp.f32 %v1072_v63 }
 0x304   :  { %v3565_v59 = vpop.eup %3564 }
 0x305   :  { %v3567_v61 = vpop.eup %3566  ;;  %v1079_v62 = vmul.f32 %v3565_v59, %v3563_v58 }
 0x306   :  { %v1078_v0 = vmul.f32 %v3567_v61, %v1076_v60 }
 0x308   :  { %v3970_v1 = vadd.f32 %v1079_v62, %v1078_v0 }
 0x30a   :  { %3570 = vtanh.f32 %v3970_v1  ;;  %v1403_v42 = vrot.slane %v3970_v1, 6 }
 0x30c   :  { %v3569_v2 = vpop.eup %3568 }
 0x314   :  { %v3571_v5 = vpop.eup %3570 }
 0x315   :  { %v1082_v7 = vmul.f32 %v3571_v5, %v3569_v2 }
 0x317   :  { %v1084_v9 = vrot.slane %v1082_v7, 4 }
 0x319   :  { %3114 = vmatmul.mubr.msk.f32.vlgmr.msra.gmra.mrb[12].mxu0 %vm118_vm1, %v1084_v9  ;;  %3125 = vmatmul.mubr.msk.f32.vlgmr.msra.gmra.mrb[12].mxu1 %vm118_vm1, %v1084_v9 }
 0x31a   :  { %3411 = vmatpush3.bf16.msra.mxu0 %v3809_v20  ;;  %3417 = vmatpush3.bf16.msra.mxu1 %v3816_v22 }
 0x31b   :  { %3412 = vmatprep.subr.bf16.mxu0 %v3700_v3  ;;  %3418 = vmatprep.subr.bf16.mxu1 %v3700_v3 }
 0x31c   :  { %3135 = vmatprep.mubr.msk.f32.mxu0 %vm3701_vm0, %v3702_v11  ;;  %3146 = vmatprep.mubr.msk.f32.mxu1 %vm3701_vm0, %v3702_v11 }
 0x31e   :  { %3414 = vmatpush3.bf16.msra.mxu0 %v3834_v27  ;;  %3420 = vmatpush3.bf16.msra.mxu1 %v3838_v28 }
 0x31f   :  { %3421 = vmatprep.subr.bf16.mxu0 %v3700_v3  ;;  %3427 = vmatprep.subr.bf16.mxu1 %v3700_v3 }
 0x321   :  { %3136 = vmatmul.mubr.msk.f32.vlgmr.msra.gmra.mrb[14].mxu0 %vm118_vm1, %v1084_v9  ;;  %3147 = vmatmul.mubr.msk.f32.vlgmr.msra.gmra.mrb[14].mxu1 %vm118_vm1, %v1084_v9 }
 0x322   :  { %3423 = vmatpush3.bf16.msra.mxu0 %v3762_v4  ;;  %3429 = vmatpush3.bf16.msra.mxu1 %v3773_v8 }
 0x323   :  { %3424 = vmatprep.subr.bf16.mxu0 %v3700_v3  ;;  %3430 = vmatprep.subr.bf16.mxu1 %v3700_v3 }
 0x324   :  { %3157 = vmatprep.mubr.msk.f32.mxu0 %vm3701_vm0, %v3702_v11  ;;  %3168 = vmatprep.mubr.msk.f32.mxu1 %vm3701_vm0, %v3702_v11 }
 0x326   :  { %3426 = vmatpush3.bf16.msra.mxu0 %v3786_v12  ;;  %3432 = vmatpush3.bf16.msra.mxu1 %v3790_v14 }
 0x327   :  { %3433 = vmatprep.subr.bf16.mxu0 %v3700_v3  ;;  %3439 = vmatprep.subr.bf16.mxu1 %v3700_v3 }
 0x3ec   :  { %v1153_v10 = vpop.f32.mrb[12].mxu0  ;;  %v1223_v13 = vpop.f32.mrb[12].mxu1 }
 0x3ed   :  { %v1368_v15 = vrot.slane %v1153_v10, 2  ;;  %v1378_v17 = vrot.slane %v1223_v13, 2  ;;  %v3115_v18 = vpop.f32.mrb[13].mxu0  ;;  %v3126_v19 = vpop.f32.mrb[13].mxu1 }
 0x3ef   :  { %v1370_v21 = vadd.f32 %v1368_v15, %v3886_v56  ;;  %v1380_v23 = vadd.f32 %v1378_v17, %v3888_v57 }
 0x3f1   :  { %v2781_v24 = vmul.f32 -1.442695, %v1370_v21  ;;  %v2782_v25 = vmul.f32 -1.442695, %v1380_v23 }
 0x3f3   :  { %3572 = vpow2.f32 %v2781_v24 }
 0x3f4   :  { %3574 = vpow2.f32 %v2782_v25  ;;  %v1293_v26 = vpop.f32.mrb[14].mxu0  ;;  %v1363_v29 = vpop.f32.mrb[14].mxu1 }
 0x3f5   :  { %v1393_v30 = vrot.slane %v1363_v29, 2  ;;  %v3137_v31 = vpop.f32.mrb[15].mxu0  ;;  %v3148_v32 = vpop.f32.mrb[15].mxu1  ;;  %v1388_v33 = vrot.slane %v1293_v26, 2 }
 0x3f7   :  { %v1395_v34 = vadd.f32 %v1393_v30, %v3892_v6  ;;  %v1390_v36 = vadd.f32 %v1388_v33, %v3895_v16 }
 0x3f9   :  { %v2783_v35 = vmul.f32 -1.442695, %v1395_v34 }
 0x3fb   :  { %3576 = vpow2.f32 %v2783_v35 }
 0x3fc   :  { %3578 = vtanh.f32 %v1390_v36 }
 0x3fd   :  { %v3573_v37 = vpop.eup %3572 }
 0x3fe   :  { %v3575_v38 = vpop.eup %3574  ;;  %v1374_v56 = vadd.f32 1.0, %v3573_v37 }
 0x3ff   :  { %v1384_v57 = vadd.f32 1.0, %v3575_v38 }
 0x400   :  { %3580 = vrcp.f32 %v1374_v56 }
 0x401   :  { %3582 = vrcp.f32 %v1384_v57 }
 0x405   :  { %v3577_v39 = vpop.eup %3576 }
 0x406   :  { %v3579_v40 = vpop.eup %3578  ;;  %v1399_v45 = vadd.f32 1.0, %v3577_v39 }
 0x408   :  { %3584 = vrcp.f32 %v1399_v45 }
 0x40a   :  { %v3581_v41 = vpop.eup %3580 }
 0x40b   :  { %v3583_v43 = vpop.eup %3582  ;;  %v1406_v44 = vmul.f32 %v3581_v41, %v3579_v40 }
 0x40c   :  { %v1405_v6 = vmul.f32 %v3583_v43, %v1403_v42 }
 0x40e   :  { %v4006_v46 = vadd.f32 %v1406_v44, %v1405_v6 }
 0x410   :  { %3586 = vtanh.f32 %v4006_v46  ;;  %v1718_v24 = vrot.slane %v4006_v46, 6 }
 0x412   :  { %v3585_v16 = vpop.eup %3584 }
 0x41a   :  { %v3587_v47 = vpop.eup %3586 }
 0x41b   :  { %v1409_v48 = vmul.f32 %v3587_v47, %v3585_v16 }
 0x41d   :  { %v1411_v49 = vrot.slane %v1409_v48, 6 }
 0x41f   :  { %3158 = vmatmul.mubr.msk.f32.vlgmr.msra.gmra.mrb[16].mxu0 %vm118_vm1, %v1411_v49  ;;  %3169 = vmatmul.mubr.msk.f32.vlgmr.msra.gmra.mrb[16].mxu1 %vm118_vm1, %v1411_v49 }
 0x420   :  { %3435 = vmatpush3.bf16.msra.mxu0 %v3809_v20  ;;  %3441 = vmatpush3.bf16.msra.mxu1 %v3816_v22 }
 0x421   :  { %3436 = vmatprep.subr.bf16.mxu0 %v3700_v3  ;;  %3442 = vmatprep.subr.bf16.mxu1 %v3700_v3 }
 0x422   :  { %3179 = vmatprep.mubr.msk.f32.mxu0 %vm3701_vm0, %v3702_v11  ;;  %3190 = vmatprep.mubr.msk.f32.mxu1 %vm3701_vm0, %v3702_v11 }
 0x424   :  { %3438 = vmatpush3.bf16.msra.mxu0 %v3834_v27  ;;  %3444 = vmatpush3.bf16.msra.mxu1 %v3838_v28 }
 0x425   :  { %3445 = vmatprep.subr.bf16.mxu0 %v3700_v3  ;;  %3451 = vmatprep.subr.bf16.mxu1 %v3700_v3 }
 0x427   :  { %3180 = vmatmul.mubr.msk.f32.vlgmr.msra.gmra.mrb[18].mxu0 %vm118_vm1, %v1411_v49  ;;  %3191 = vmatmul.mubr.msk.f32.vlgmr.msra.gmra.mrb[18].mxu1 %vm118_vm1, %v1411_v49 }
 0x428   :  { %3447 = vmatpush3.bf16.msra.mxu0 %v3762_v4  ;;  %3453 = vmatpush3.bf16.msra.mxu1 %v3773_v8 }
 0x429   :  { %3448 = vmatprep.subr.bf16.mxu0 %v3700_v3  ;;  %3454 = vmatprep.subr.bf16.mxu1 %v3700_v3 }
 0x42a   :  { %3201 = vmatprep.mubr.msk.f32.mxu0 %vm3701_vm0, %v3702_v11  ;;  %3212 = vmatprep.mubr.msk.f32.mxu1 %vm3701_vm0, %v3702_v11 }
 0x42c   :  { %3450 = vmatpush3.bf16.msra.mxu0 %v3786_v12  ;;  %3456 = vmatpush3.bf16.msra.mxu1 %v3790_v14 }
 0x42d   :  { %3457 = vmatprep.subr.bf16.mxu0 %v3700_v3  ;;  %3463 = vmatprep.subr.bf16.mxu1 %v3700_v3 }
 0x4f2   :  { %v1480_v54 = vpop.f32.mrb[16].mxu0  ;;  %v1550_v55 = vpop.f32.mrb[16].mxu1 }
 0x4f3   :  { %v1694_v58 = vadd.f32 %v1480_v54, %v3878_v50  ;;  %v1701_v59 = vadd.f32 %v1550_v55, %v3880_v51  ;;  %v3159_v60 = vpop.f32.mrb[17].mxu0  ;;  %v3170_v61 = vpop.f32.mrb[17].mxu1 }
 0x4f5   :  { %v2788_v62 = vmul.f32 -1.442695, %v1694_v58  ;;  %v2789_v63 = vmul.f32 -1.442695, %v1701_v59 }
 0x4f7   :  { %3588 = vpow2.f32 %v2788_v62 }
 0x4f8   :  { %3590 = vpow2.f32 %v2789_v63 }
 0x4fa   :  { %v1620_v0 = vpop.f32.mrb[18].mxu0  ;;  %v1690_v1 = vpop.f32.mrb[18].mxu1 }
 0x4fb   :  { %v1710_v2 = vadd.f32 %v1690_v1, %v3884_v53  ;;  %v3181_v5 = vpop.f32.mrb[19].mxu0  ;;  %v3192_v7 = vpop.f32.mrb[19].mxu1  ;;  %v1708_v10 = vadd.f32 %v1620_v0, %v3882_v52 }
 0x4fd   :  { %v2790_v9 = vmul.f32 -1.442695, %v1710_v2 }
 0x4ff   :  { %3592 = vpow2.f32 %v2790_v9 }
 0x500   :  { %3594 = vtanh.f32 %v1708_v10 }
 0x501   :  { %v3589_v13 = vpop.eup %3588 }
 0x502   :  { %v3591_v15 = vpop.eup %3590  ;;  %v1698_v17 = vadd.f32 1.0, %v3589_v13 }
 0x503   :  { %v1705_v18 = vadd.f32 1.0, %v3591_v15 }
 0x504   :  { %3596 = vrcp.f32 %v1698_v17 }
 0x505   :  { %3598 = vrcp.f32 %v1705_v18 }
 0x509   :  { %v3593_v19 = vpop.eup %3592 }
 0x50a   :  { %v3595_v21 = vpop.eup %3594  ;;  %v1714_v29 = vadd.f32 1.0, %v3593_v19 }
 0x50c   :  { %3600 = vrcp.f32 %v1714_v29 }
 0x50e   :  { %v3597_v23 = vpop.eup %3596 }
 0x50f   :  { %v3599_v25 = vpop.eup %3598  ;;  %v1721_v26 = vmul.f32 %v3597_v23, %v3595_v21 }
 0x510   :  { %v1720_v30 = vmul.f32 %v3599_v25, %v1718_v24 }
 0x512   :  { %v4042_v31 = vadd.f32 %v1721_v26, %v1720_v30 }
 0x514   :  { %3602 = vtanh.f32 %v4042_v31  ;;  %v2044_v63 = vrot.slane %v4042_v31, 6 }
 0x516   :  { %v3601_v32 = vpop.eup %3600 }
 0x51e   :  { %v3603_v33 = vpop.eup %3602 }
 0x51f   :  { %v1724_v34 = vmul.f32 %v3603_v33, %v3601_v32 }
 0x521   :  { %3202 = vmatmul.mubr.msk.f32.vlgmr.msra.gmra.mrb[20].mxu0 %vm118_vm1, %v1724_v34  ;;  %3213 = vmatmul.mubr.msk.f32.vlgmr.msra.gmra.mrb[20].mxu1 %vm118_vm1, %v1724_v34 }
 0x522   :  { %3459 = vmatpush3.bf16.msra.mxu0 %v3809_v20  ;;  %3465 = vmatpush3.bf16.msra.mxu1 %v3816_v22 }
 0x523   :  { %3460 = vmatprep.subr.bf16.mxu0 %v3700_v3  ;;  %3466 = vmatprep.subr.bf16.mxu1 %v3700_v3 }
 0x524   :  { %3223 = vmatprep.mubr.msk.f32.mxu0 %vm3701_vm0, %v3702_v11  ;;  %3234 = vmatprep.mubr.msk.f32.mxu1 %vm3701_vm0, %v3702_v11 }
 0x526   :  { %3462 = vmatpush3.bf16.msra.mxu0 %v3834_v27  ;;  %3468 = vmatpush3.bf16.msra.mxu1 %v3838_v28 }
 0x527   :  { %3469 = vmatprep.subr.bf16.mxu0 %v3700_v3  ;;  %3475 = vmatprep.subr.bf16.mxu1 %v3700_v3 }
 0x529   :  { %3224 = vmatmul.mubr.msk.f32.vlgmr.msra.gmra.mrb[22].mxu0 %vm118_vm1, %v1724_v34  ;;  %3235 = vmatmul.mubr.msk.f32.vlgmr.msra.gmra.mrb[22].mxu1 %vm118_vm1, %v1724_v34 }
 0x52a   :  { %3471 = vmatpush3.bf16.msra.mxu0 %v3762_v4  ;;  %3477 = vmatpush3.bf16.msra.mxu1 %v3773_v8 }
 0x52b   :  { %3472 = vmatprep.subr.bf16.mxu0 %v3700_v3  ;;  %3478 = vmatprep.subr.bf16.mxu1 %v3700_v3 }
 0x52c   :  { %3245 = vmatprep.mubr.msk.f32.mxu0 %vm3701_vm0, %v3702_v11  ;;  %3256 = vmatprep.mubr.msk.f32.mxu1 %vm3701_vm0, %v3702_v11 }
 0x52e   :  { %3474 = vmatpush3.bf16.msra.mxu0 %v3786_v12  ;;  %3480 = vmatpush3.bf16.msra.mxu1 %v3790_v14 }
 0x52f   :  { %3481 = vmatprep.subr.bf16.mxu0 %v3700_v3  ;;  %3487 = vmatprep.subr.bf16.mxu1 %v3700_v3 }
 0x5f4   :  { %v1794_v35 = vpop.f32.mrb[20].mxu0  ;;  %v1864_v36 = vpop.f32.mrb[20].mxu1 }
 0x5f5   :  { %v2009_v37 = vrot.slane %v1794_v35, 6  ;;  %v2019_v38 = vrot.slane %v1864_v36, 6  ;;  %v3203_v56 = vpop.f32.mrb[21].mxu0  ;;  %v3214_v57 = vpop.f32.mrb[21].mxu1 }
 0x5f7   :  { %v2011_v39 = vadd.f32 %v2009_v37, %v3878_v50  ;;  %v2021_v40 = vadd.f32 %v2019_v38, %v3880_v51 }
 0x5f9   :  { %v2795_v41 = vmul.f32 -1.442695, %v2011_v39  ;;  %v2796_v42 = vmul.f32 -1.442695, %v2021_v40 }
 0x5fb   :  { %3604 = vpow2.f32 %v2795_v41 }
 0x5fc   :  { %3606 = vpow2.f32 %v2796_v42  ;;  %v1934_v43 = vpop.f32.mrb[22].mxu0  ;;  %v2004_v44 = vpop.f32.mrb[22].mxu1 }
 0x5fd   :  { %v2034_v45 = vrot.slane %v2004_v44, 6  ;;  %v3225_v6 = vpop.f32.mrb[23].mxu0  ;;  %v3236_v46 = vpop.f32.mrb[23].mxu1  ;;  %v2029_v16 = vrot.slane %v1934_v43, 6 }
 0x5ff   :  { %v2036_v47 = vadd.f32 %v2034_v45, %v3884_v53  ;;  %v2031_v49 = vadd.f32 %v2029_v16, %v3882_v52 }
 0x601   :  { %v2797_v48 = vmul.f32 -1.442695, %v2036_v47 }
 0x603   :  { %3608 = vpow2.f32 %v2797_v48 }
 0x604   :  { %3610 = vtanh.f32 %v2031_v49 }
 0x605   :  { %v3605_v54 = vpop.eup %3604 }
 0x606   :  { %v3607_v55 = vpop.eup %3606  ;;  %v2015_v58 = vadd.f32 1.0, %v3605_v54 }
 0x607   :  { %v2025_v59 = vadd.f32 1.0, %v3607_v55 }
 0x608   :  { %3612 = vrcp.f32 %v2015_v58 }
 0x609   :  { %3614 = vrcp.f32 %v2025_v59 }
 0x60d   :  { %v3609_v60 = vpop.eup %3608 }
 0x60e   :  { %v3611_v61 = vpop.eup %3610  ;;  %v2040_v2 = vadd.f32 1.0, %v3609_v60 }
 0x610   :  { %3616 = vrcp.f32 %v2040_v2 }
 0x612   :  { %v3613_v62 = vpop.eup %3612 }
 0x613   :  { %v3615_v0 = vpop.eup %3614  ;;  %v2047_v1 = vmul.f32 %v3613_v62, %v3611_v61 }
 0x614   :  { %v2046_v5 = vmul.f32 %v3615_v0, %v2044_v63 }
 0x616   :  { %v4078_v7 = vadd.f32 %v2047_v1, %v2046_v5 }
 0x618   :  { %3618 = vtanh.f32 %v4078_v7  ;;  %v2371_v41 = vrot.slane %v4078_v7, 6 }
 0x61a   :  { %v3617_v9 = vpop.eup %3616 }
 0x622   :  { %v3619_v10 = vpop.eup %3618 }
 0x623   :  { %v2050_v13 = vmul.f32 %v3619_v10, %v3617_v9 }
 0x625   :  { %v2052_v15 = vrot.slane %v2050_v13, 2 }
 0x627   :  { %3246 = vmatmul.mubr.msk.f32.vlgmr.msra.gmra.mrb[24].mxu0 %vm118_vm1, %v2052_v15  ;;  %3257 = vmatmul.mubr.msk.f32.vlgmr.msra.gmra.mrb[24].mxu1 %vm118_vm1, %v2052_v15 }
 0x628   :  { %3483 = vmatpush3.bf16.msra.mxu0 %v3809_v20  ;;  %3489 = vmatpush3.bf16.msra.mxu1 %v3816_v22 }
 0x629   :  { %3484 = vmatprep.subr.bf16.mxu0 %v3700_v3  ;;  %3490 = vmatprep.subr.bf16.mxu1 %v3700_v3 }
 0x62a   :  { %3267 = vmatprep.mubr.msk.f32.mxu0 %vm3701_vm0, %v3702_v11  ;;  %3278 = vmatprep.mubr.msk.f32.mxu1 %vm3701_vm0, %v3702_v11 }
 0x62c   :  { %3486 = vmatpush3.bf16.msra.mxu0 %v3834_v27  ;;  %3492 = vmatpush3.bf16.msra.mxu1 %v3838_v28 }
 0x62d   :  { %3493 = vmatprep.subr.bf16.mxu0 %v3700_v3  ;;  %3499 = vmatprep.subr.bf16.mxu1 %v3700_v3 }
 0x62f   :  { %3268 = vmatmul.mubr.msk.f32.vlgmr.msra.gmra.mrb[26].mxu0 %vm118_vm1, %v2052_v15  ;;  %3279 = vmatmul.mubr.msk.f32.vlgmr.msra.gmra.mrb[26].mxu1 %vm118_vm1, %v2052_v15 }
 0x630   :  { %3495 = vmatpush3.bf16.msra.mxu0 %v3762_v4  ;;  %3501 = vmatpush3.bf16.msra.mxu1 %v3773_v8 }
 0x631   :  { %3496 = vmatprep.subr.bf16.mxu0 %v3700_v3  ;;  %3502 = vmatprep.subr.bf16.mxu1 %v3700_v3 }
 0x632   :  { %3289 = vmatprep.mubr.msk.f32.mxu0 %vm3701_vm0, %v3702_v11  ;;  %3300 = vmatprep.mubr.msk.f32.mxu1 %vm3701_vm0, %v3702_v11 }
 0x634   :  { %3498 = vmatpush3.bf16.msra.mxu0 %v3786_v12  ;;  %3504 = vmatpush3.bf16.msra.mxu1 %v3790_v14 }
 0x635   :  { %3505 = vmatprep.subr.bf16.mxu0 %v3700_v3  ;;  %3511 = vmatprep.subr.bf16.mxu1 %v3700_v3 }
 0x6fa   :  { %v2121_v4 = vpop.f32.mrb[24].mxu0  ;;  %v2191_v8 = vpop.f32.mrb[24].mxu1 }
 0x6fb   :  { %v2336_v17 = vrot.slane %v2121_v4, 4  ;;  %v2346_v18 = vrot.slane %v2191_v8, 4  ;;  %v3247_v19 = vpop.f32.mrb[25].mxu0  ;;  %v3258_v21 = vpop.f32.mrb[25].mxu1 }
 0x6fd   :  { %v2338_v23 = vadd.f32 %v2336_v17, %v3878_v50  ;;  %v2348_v24 = vadd.f32 %v2346_v18, %v3880_v51 }
 0x6ff   :  { %v2802_v25 = vmul.f32 -1.442695, %v2338_v23  ;;  %v2803_v26 = vmul.f32 -1.442695, %v2348_v24  ;;  %v2812_v23 = vld [vmem:[%s4169_s4] ss:$0 sm:$0xff] }
 0x701   :  { %3620 = vpow2.f32 %v2802_v25 }
 0x702   :  { %3622 = vpow2.f32 %v2803_v26  ;;  %v2261_v12 = vpop.f32.mrb[26].mxu0  ;;  %v2331_v14 = vpop.f32.mrb[26].mxu1 }
 0x703   :  { %v2361_v29 = vrot.slane %v2331_v14, 4  ;;  %v3269_v30 = vpop.f32.mrb[27].mxu0  ;;  %v3280_v31 = vpop.f32.mrb[27].mxu1  ;;  %v2356_v32 = vrot.slane %v2261_v12, 4 }
 0x705   :  { %v2363_v33 = vadd.f32 %v2361_v29, %v3884_v53  ;;  %v2358_v35 = vadd.f32 %v2356_v32, %v3882_v52 }
 0x707   :  { %v2804_v34 = vmul.f32 -1.442695, %v2363_v33 }
 0x709   :  { %3624 = vpow2.f32 %v2804_v34 }
 0x70a   :  { %3626 = vtanh.f32 %v2358_v35 }
 0x70b   :  { %v3621_v36 = vpop.eup %3620 }
 0x70c   :  { %v3623_v37 = vpop.eup %3622  ;;  %v2342_v38 = vadd.f32 1.0, %v3621_v36 }
 0x70d   :  { %v2352_v56 = vadd.f32 1.0, %v3623_v37 }
 0x70e   :  { %3628 = vrcp.f32 %v2342_v38 }
 0x70f   :  { %3630 = vrcp.f32 %v2352_v56 }
 0x713   :  { %v3625_v57 = vpop.eup %3624 }
 0x714   :  { %v3627_v39 = vpop.eup %3626  ;;  %v2367_v44 = vadd.f32 1.0, %v3625_v57 }
 0x716   :  { %3632 = vrcp.f32 %v2367_v44 }
 0x718   :  { %v3629_v40 = vpop.eup %3628 }
 0x719   :  { %v3631_v42 = vpop.eup %3630  ;;  %v2374_v43 = vmul.f32 %v3629_v40, %v3627_v39 }
 0x71a   :  { %v2373_v45 = vmul.f32 %v3631_v42, %v2371_v41 }
 0x71c   :  { %v2375_v6 = vadd.f32 %v2374_v43, %v2373_v45 }
 0x71e   :  { %3634 = vtanh.f32 %v2375_v6  ;;  %v2698_v4 = vrot.slane %v2375_v6, 6 }
 0x720   :  { %v3633_v46 = vpop.eup %3632 }
 0x728   :  { %v3635_v16 = vpop.eup %3634 }
 0x729   :  { %v2377_v47 = vmul.f32 %v3635_v16, %v3633_v46 }
 0x72b   :  { %v2379_v48 = vrot.slane %v2377_v47, 4 }
 0x72d   :  { %3290 = vmatmul.mubr.msk.f32.vlgmr.msra.gmra.mrb[28].mxu0 %vm118_vm1, %v2379_v48  ;;  %3301 = vmatmul.mubr.msk.f32.vlgmr.msra.gmra.mrb[28].mxu1 %vm118_vm1, %v2379_v48 }
 0x72e   :  { %3507 = vmatpush3.bf16.msra.mxu0 %v3809_v20  ;;  %3513 = vmatpush3.bf16.msra.mxu1 %v3816_v22 }
 0x72f   :  { %3508 = vmatprep.subr.bf16.mxu0 %v3700_v3  ;;  %3514 = vmatprep.subr.bf16.mxu1 %v3700_v3 }
 0x730   :  { %3311 = vmatprep.mubr.msk.f32.mxu0 %vm3701_vm0, %v3702_v11  ;;  %3322 = vmatprep.mubr.msk.f32.mxu1 %vm3701_vm0, %v3702_v11 }
 0x732   :  { %3510 = vmatpush3.bf16.msra.mxu0 %v3834_v27  ;;  %3516 = vmatpush3.bf16.msra.mxu1 %v3838_v28 }
 0x735   :  { %3312 = vmatmul.mubr.msk.f32.vlgmr.msra.gmra.mrb[30].mxu0 %vm118_vm1, %v2379_v48  ;;  %3323 = vmatmul.mubr.msk.f32.vlgmr.msra.gmra.mrb[30].mxu1 %vm118_vm1, %v2379_v48 }
 0x800   :  { %v2448_v20 = vpop.f32.mrb[28].mxu0  ;;  %v2518_v22 = vpop.f32.mrb[28].mxu1 }
 0x801   :  { %v2663_v49 = vrot.slane %v2448_v20, 2  ;;  %v2673_v54 = vrot.slane %v2518_v22, 2  ;;  %v3291_v55 = vpop.f32.mrb[29].mxu0  ;;  %v3302_v3 = vpop.f32.mrb[29].mxu1 }
 0x803   :  { %v2665_v58 = vadd.f32 %v2663_v49, %v3878_v50  ;;  %v2675_v59 = vadd.f32 %v2673_v54, %v3880_v51 }
 0x805   :  { %v2809_v60 = vmul.f32 -1.442695, %v2665_v58  ;;  %v2810_v11 = vmul.f32 -1.442695, %v2675_v59 }
 0x807   :  { %3636 = vpow2.f32 %v2809_v60 }
 0x808   :  { %3638 = vpow2.f32 %v2810_v11  ;;  %v2588_v27 = vpop.f32.mrb[30].mxu0  ;;  %v2658_v28 = vpop.f32.mrb[30].mxu1 }
 0x809   :  { %v2688_v61 = vrot.slane %v2658_v28, 2  ;;  %v3313_v62 = vpop.f32.mrb[31].mxu0  ;;  %v3324_v63 = vpop.f32.mrb[31].mxu1  ;;  %v2683_v0 = vrot.slane %v2588_v27, 2 }
 0x80b   :  { %v2690_v1 = vadd.f32 %v2688_v61, %v3884_v53  ;;  %v2685_v5 = vadd.f32 %v2683_v0, %v3882_v52 }
 0x80d   :  { %v2811_v2 = vmul.f32 -1.442695, %v2690_v1 }
 0x80f   :  { %3640 = vpow2.f32 %v2811_v2 }
 0x810   :  { %3642 = vtanh.f32 %v2685_v5 }
 0x811   :  { %v3637_v7 = vpop.eup %3636 }
 0x812   :  { %v3639_v9 = vpop.eup %3638  ;;  %v2669_v50 = vadd.f32 1.0, %v3637_v7 }
 0x813   :  { %v2679_v51 = vadd.f32 1.0, %v3639_v9 }
 0x814   :  { %3644 = vrcp.f32 %v2669_v50 }
 0x815   :  { %3646 = vrcp.f32 %v2679_v51 }
 0x819   :  { %v3641_v10 = vpop.eup %3640 }
 0x81a   :  { %v3643_v13 = vpop.eup %3642  ;;  %v2694_v18 = vadd.f32 1.0, %v3641_v10 }
 0x81c   :  { %3648 = vrcp.f32 %v2694_v18 }
 0x81e   :  { %v3645_v15 = vpop.eup %3644 }
 0x81f   :  { %v3647_v8 = vpop.eup %3646  ;;  %v2701_v17 = vmul.f32 %v3645_v15, %v3643_v13 }
 0x820   :  { %v2700_v19 = vmul.f32 %v3647_v8, %v2698_v4 }
 0x822   :  { %v2702_v53 = vadd.f32 %v2701_v17, %v2700_v19 }
 0x824   :  { %3650 = vtanh.f32 %v2702_v53  ;;  %2707 = vst.msk [vmem:[#allocation5 - $0x6] sm:$0xc0] %vm2705_vm2, %v2702_v53 }
 0x826   :  { %v3649_v52 = vpop.eup %3648 }
 0x82e   :  { %v3651_v21 = vpop.eup %3650 }
 0x82f   :  { %v2704_v24 = vmul.f32 %v3651_v21, %v3649_v52 }
 0x831   :  { %v2715_v25 = vmul.f32 %v2812_v23, %v2704_v24  ;;  %2706 = vst.msk [vmem:[#allocation3 - $0x6] sm:$0xc0] %vm2705_vm2, %v2704_v24 }
 0x833   :  { %v2716_v26 = vsel %vm2705_vm2, %v2715_v25, 0.0 }
 0x834   :  { %2717 = vadd.xlane.f32.xlu1 %v2716_v26 }
 0x835   :  { %3663 = shalt.err (!%p3660_p4)
}
 0x836   :  { %s3664_s11 = scalar_lea.hbm %s4172_s7, 32 }
 0x837   :  { %p3665_p5 = scmp.ne.s32.totalorder %s4172_s7, %s3664_s11  ;;  %p3668_p6 = scmp.lt.u32.totalorder %s3664_s11, %s4172_s7 }
 0x839   :  { %p3670_p7 = pnand %p3668_p6, %p3665_p5 }
 0x83b   :  { %3673 = shalt.err (!%p3670_p7)
}
 0x83c   :  { %2735 = dma.vmem_to_hbm [thread:$0]  %s2733_s28, 32, %s4172_s7, [#allocation4]  }
 0x83d   :  { %s3674_s17 = scalar_lea.vmem %s2743_s30, 32  ;;  %p3679_p9 = scmp.lt.s32.totalorder %s2743_s30, %s2743_s30 }
 0x83e   :  { %p3675_p8 = scmp.ne.s32.totalorder %s2743_s30, %s3674_s17  ;;  %p3680_p10 = scmp.lt.s32.totalorder %s3674_s17, %s3674_s17 }
 0x840   :  { %p3681_p11 = por %p3680_p10, %p3679_p9 }
 0x842   :  { %p3682_p12 = pnand %p3681_p11, %p3675_p8 }
 0x844   :  { %3685 = shalt.err (!%p3682_p12)
}
 0x845   :  { %s3686_s19 = scalar_lea.hbm %s4173_s8, 32 }
 0x846   :  { %p3687_p13 = scmp.ne.s32.totalorder %s4173_s8, %s3686_s19  ;;  %p3690_p0 = scmp.lt.u32.totalorder %s3686_s19, %s4173_s8 }
 0x848   :  { %p3692_p1 = pnand %p3690_p0, %p3687_p13 }
 0x84a   :  { %3695 = shalt.err (!%p3692_p1)
}
 0x84b   :  { %2745 = dma.vmem_to_hbm [thread:$0]  %s2743_s30, 32, %s4173_s8, [#allocation6]   ;;  %v2720_v12 = vstv %s4170_s5  ;;  %vm2722_vm3 = vcmask 7174  }
 0x8c1   :  { %v2718_v14 = vpop.xlane.xlu1 %2717 }
 0x8c2   :  { %v2721_v29 = vadd.f32 %v2720_v12, %v2718_v14 }
 0x8c4   :  { %2723 = vst.msk [vmem:[%s4171_s6 - $0x6] sm:$0xc0] %vm2722_vm3, %v2721_v29 }
 0x8c5   :  { %3696 = dma.done.wait [#allocation4], 32  }
 0x8c6   :  { %3697 = vsyncadd [#allocation4], 4294967264 }
 0x8c7   :  { %3698 = dma.done.wait [#allocation6], 32  }
 0x8c8   :  { %3699 = vsyncadd [#allocation6], 4294967264 }
 0x8c9   :  { %2754 = vsyncpa [#allocation4], 1 }
 0x8ca   :  { %2755 = vsyncpa [#allocation6], 1 }

</bundles_post_ra>
